<compile_context>
chip_gen: v7x
topology: tpu7x:2x2x1
jax: 0.10.0
libtpu: 0.0.40
codegen_flags: <defaults>
</compile_context>

<pallas_src>
import functools

import jax
import jax.numpy as jnp
from jax import lax
from jax.experimental import pallas as pl
from jax.experimental.pallas import tpu as pltpu


# Use single-buffered weight blocks / explicit VMEM limit only at real model
# widths (keeps the small self-test on the plain, maximally-safe path).
_SINGLE_BUFFER_MIN_D = 256


def _ln(x, g, b, eps=1e-5):
    mu = jnp.mean(x, axis=-1, keepdims=True)
    var = jnp.mean((x - mu) ** 2, axis=-1, keepdims=True)
    return (x - mu) * lax.rsqrt(var + eps) * g + b


def _quick_gelu(x):
    # TODO(synk): wrapped model's activation is unknown; CLIP text encoders use
    # QuickGELU, so both kernel and reference use it.
    return x * jax.nn.sigmoid(1.702 * x)


# ----------------------------------------------------------------------------
# Single fused kernel: one batch element per grid step.
#   pos add -> LN1 -> K,V (all S) + Q (trailing rows) -> last-row attention
#   -> W_o + residual -> LN2 + MLP + residual -> final LN -> projection
# ----------------------------------------------------------------------------
def _text_encoder_kernel(x_ref, pos_ref,
                         ln1_g_ref, ln1_b_ref,
                         wq_ref, bq_ref, wk_ref, bk_ref, wv_ref, bv_ref,
                         wo_ref, bo_ref,
                         ln2_g_ref, ln2_b_ref,
                         w1_ref, b1_ref, w2_ref, b2_ref,
                         lnf_g_ref, lnf_b_ref,
                         wp_ref,
                         o_ref, *, num_heads, scale, tail):
    S, D = pos_ref.shape
    dh = D // num_heads
    R = tail  # trailing query rows carried; only the last one is stored

    # positional embedding added in-kernel (no extra HBM pass)
    x = x_ref[0].astype(jnp.float32) + pos_ref[...]                 # [S, D]

    # ---- pre-LN over the full sequence (K/V need every position) ----
    y16 = _ln(x, ln1_g_ref[...], ln1_b_ref[...]).astype(jnp.bfloat16)

    k = (jnp.dot(y16, wk_ref[...], preferred_element_type=jnp.float32)
         + bk_ref[...]).astype(jnp.bfloat16)                        # [S, D]
    v = (jnp.dot(y16, wv_ref[...], preferred_element_type=jnp.float32)
         + bv_ref[...]).astype(jnp.bfloat16)                        # [S, D]

    # Q only for the trailing rows (scale folded into q)
    y_tail = y16[S - R:S, :]                                        # [R, D]
    q = (jnp.dot(y_tail, wq_ref[...], preferred_element_type=jnp.float32)
         + bq_ref[...]) * scale                                     # [R, D] f32

    # ---- attention for trailing rows.  The last row's causal mask is all-ones
    # (it may attend to every position), so no mask is needed; the other R-1
    # rows are dead work that is discarded before the store.
    head_outs = []
    for h in range(num_heads):
        q_h = q[:, h * dh:(h + 1) * dh].astype(jnp.bfloat16)        # [R, dh]
        k_h = k[:, h * dh:(h + 1) * dh]                             # [S, dh]
        v_h = v[:, h * dh:(h + 1) * dh]                             # [S, dh]
        s = lax.dot_general(q_h, k_h, (((1,), (1,)), ((), ())),
                            preferred_element_type=jnp.float32)     # [R, S]
        s = s - jnp.max(s, axis=-1, keepdims=True)
        p = jnp.exp(s)
        p = p * pl.reciprocal(jnp.sum(p, axis=-1, keepdims=True), approx=True)
        head_outs.append(jnp.dot(p.astype(jnp.bfloat16), v_h,
                                 preferred_element_type=jnp.float32))  # [R, dh]
    a = jnp.concatenate(head_outs, axis=-1)                         # [R, D]

    attn = (jnp.dot(a.astype(jnp.bfloat16), wo_ref[...],
                    preferred_element_type=jnp.float32) + bo_ref[...])
    h1 = x[S - R:S, :] + attn                                       # residual [R, D]

    # ---- LN2 + MLP + residual (trailing rows only) ----
    y2 = _ln(h1, ln2_g_ref[...], ln2_b_ref[...]).astype(jnp.bfloat16)
    g = (jnp.dot(y2, w1_ref[...], preferred_element_type=jnp.float32)
         + b1_ref[...])
    g = _quick_gelu(g)
    m = (jnp.dot(g.astype(jnp.bfloat16), w2_ref[...],
                 preferred_element_type=jnp.float32) + b2_ref[...])
    h2 = h1 + m                                                     # [R, D]

    # ---- final LN + bias-free projection; store only the pooled (last) row ----
    y3 = _ln(h2, lnf_g_ref[...], lnf_b_ref[...]).astype(jnp.bfloat16)
    proj = jnp.dot(y3, wp_ref[...], preferred_element_type=jnp.float32)
    o_ref[0] = proj[R - 1:R, :]


# ----------------------------------------------------------------------------
# One-time parameter preprocessing (hoisted out of the per-forward path):
# bf16 weight casts, QKV weight/bias split, bias/LN params reshaped to (1, N).
# ----------------------------------------------------------------------------
def prepare_params(raw):
    D = raw["w_qkv"].shape[0]
    D4 = raw["w1"].shape[1]
    bq = raw["b_qkv"]
    return dict(
        pos_emb=raw["pos_emb"],
        ln1_g=raw["ln1_g"].reshape(1, D), ln1_b=raw["ln1_b"].reshape(1, D),
        w_q=raw["w_qkv"][:, :D].astype(jnp.bfloat16),
        w_k=raw["w_qkv"][:, D:2 * D].astype(jnp.bfloat16),
        w_v=raw["w_qkv"][:, 2 * D:].astype(jnp.bfloat16),
        b_q=bq[:D].reshape(1, D),
        b_k=bq[D:2 * D].reshape(1, D),
        b_v=bq[2 * D:].reshape(1, D),
        w_o=raw["w_o"].astype(jnp.bfloat16), b_o=raw["b_o"].reshape(1, D),
        ln2_g=raw["ln2_g"].reshape(1, D), ln2_b=raw["ln2_b"].reshape(1, D),
        w1=raw["w1"].astype(jnp.bfloat16), b1=raw["b1"].reshape(1, D4),
        w2=raw["w2"].astype(jnp.bfloat16), b2=raw["b2"].reshape(1, D),
        lnf_g=raw["lnf_g"].reshape(1, D), lnf_b=raw["lnf_b"].reshape(1, D),
        w_proj=raw["w_proj"].astype(jnp.bfloat16),
    )


# ----------------------------------------------------------------------------
# encode_text — Pallas version (== TextEncoder.forward)
# ----------------------------------------------------------------------------
def encode_text(params, text_embeddings, *, num_heads):
    B, S, D = text_embeddings.shape
    D4 = params["w1"].shape[1]
    DPROJ = params["w_proj"].shape[1]
    tail = min(8, S)
    big = D >= _SINGLE_BUFFER_MIN_D

    kern = functools.partial(
        _text_encoder_kernel, num_heads=num_heads,
        scale=1.0 / float((D // num_heads) ** 0.5), tail=tail)

    def wspec(shape):            # large weights, constant block index
        nd = len(shape)
        if big:
            return pl.BlockSpec(shape, lambda b: (0,) * nd,
                                pipeline_mode=pl.Buffered(1))
        return pl.BlockSpec(shape, lambda b: (0,) * nd)

    def cspec(shape):            # small constants (biases, LN params, pos_emb)
        nd = len(shape)
        return pl.BlockSpec(shape, lambda b: (0,) * nd)

    out3 = pl.pallas_call(
        kern,
        out_shape=jax.ShapeDtypeStruct((B, 1, DPROJ), jnp.float32),
        grid=(B,),
        in_specs=[
            pl.BlockSpec((1, S, D), lambda b: (b, 0, 0)),   # text_embeddings
            cspec((S, D)),                                  # pos_emb
            cspec((1, D)), cspec((1, D)),                   # ln1
            wspec((D, D)), cspec((1, D)),                   # w_q, b_q
            wspec((D, D)), cspec((1, D)),                   # w_k, b_k
            wspec((D, D)), cspec((1, D)),                   # w_v, b_v
            wspec((D, D)), cspec((1, D)),                   # w_o, b_o
            cspec((1, D)), cspec((1, D)),                   # ln2
            wspec((D, D4)), cspec((1, D4)),                 # w1, b1
            wspec((D4, D)), cspec((1, D)),                  # w2, b2
            cspec((1, D)), cspec((1, D)),                   # lnf
            wspec((D, DPROJ)),                              # w_proj
        ],
        out_specs=pl.BlockSpec((1, 1, DPROJ), lambda b: (b, 0, 0)),
        compiler_params=pltpu.CompilerParams(
            dimension_semantics=("parallel",),
            vmem_limit_bytes=(48 * 1024 * 1024) if big else None,
        ),
    )(text_embeddings, params["pos_emb"],
      params["ln1_g"], params["ln1_b"],
      params["w_q"], params["b_q"],
      params["w_k"], params["b_k"],
      params["w_v"], params["b_v"],
      params["w_o"], params["b_o"],
      params["ln2_g"], params["ln2_b"],
      params["w1"], params["b1"],
      params["w2"], params["b2"],
      params["lnf_g"], params["lnf_b"],
      params["w_proj"])
    return out3.reshape(B, DPROJ)


# ----------------------------------------------------------------------------
# Parameters (deterministic, in-script) — raw (f32, fused QKV) form
# ----------------------------------------------------------------------------
def init_params(key, S, D, H, DPROJ):
    ks = jax.random.split(key, 8)
    sc = 0.02
    return dict(
        pos_emb=sc * jax.random.normal(ks[0], (S, D), jnp.float32),
        ln1_g=jnp.ones((D,), jnp.float32), ln1_b=jnp.zeros((D,), jnp.float32),
        w_qkv=sc * jax.random.normal(ks[1], (D, 3 * D), jnp.float32),
        b_qkv=jnp.zeros((3 * D,), jnp.float32),
        w_o=sc * jax.random.normal(ks[2], (D, D), jnp.float32),
        b_o=jnp.zeros((D,), jnp.float32),
        ln2_g=jnp.ones((D,), jnp.float32), ln2_b=jnp.zeros((D,), jnp.float32),
        w1=sc * jax.random.normal(ks[3], (D, 4 * D), jnp.float32),
        b1=jnp.zeros((4 * D,), jnp.float32),
        w2=sc * jax.random.normal(ks[4], (4 * D, D), jnp.float32),
        b2=jnp.zeros((D,), jnp.float32),
        lnf_g=jnp.ones((D,), jnp.float32), lnf_b=jnp.zeros((D,), jnp.float32),
        w_proj=sc * jax.random.normal(ks[5], (D, DPROJ), jnp.float32),
    )


# ----------------------------------------------------------------------------
# Pure-JAX f32 reference (full-sequence math, pooled at the end) for checking
# ----------------------------------------------------------------------------
def encode_text_ref(params, text_embeddings, *, num_heads):
    B, S, D = text_embeddings.shape
    H = num_heads
    dh = D // H

    x = text_embeddings + params["pos_emb"][None]
    h = _ln(x, params["ln1_g"], params["ln1_b"])
    qkv = h @ params["w_qkv"] + params["b_qkv"]
    qkv = qkv.reshape(B, S, 3, H, dh)
    q = qkv[:, :, 0].transpose(0, 2, 1, 3)
    k = qkv[:, :, 1].transpose(0, 2, 1, 3)
    v = qkv[:, :, 2].transpose(0, 2, 1, 3)
    s = jnp.einsum("bhqd,bhkd->bhqk", q, k) / (dh ** 0.5)
    mask = jnp.tril(jnp.ones((S, S), bool))
    s = jnp.where(mask[None, None], s, -1e30)
    p = jax.nn.softmax(s, axis=-1)
    a = jnp.einsum("bhqk,bhkd->bhqd", p, v).transpose(0, 2, 1, 3).reshape(B, S, D)
    x = x + (a @ params["w_o"] + params["b_o"])
    h = _ln(x, params["ln2_g"], params["ln2_b"])
    x = x + (_quick_gelu(h @ params["w1"] + params["b1"]) @ params["w2"]
             + params["b2"])
    xf = _ln(x, params["lnf_g"], params["lnf_b"])
    # TODO(synk): CLIP pools at argmax(token_id) (EOT); token ids are not
    # available here (input is already embeddings), so pool the last token.
    return xf[:, -1, :] @ params["w_proj"]


# ----------------------------------------------------------------------------
if __name__ == "__main__":
    B, S, D, H, DPROJ = 2, 8, 32, 4, 32
    key = jax.random.PRNGKey(0)
    kx, kp = jax.random.split(key)
    text_embeddings = jax.random.normal(kx, (B, S, D), jnp.float32)
    raw_params = init_params(kp, S, D, H, DPROJ)

    # one-time weight prep (bf16 cast / QKV split), outside the forward path
    params = prepare_params(raw_params)

    out = encode_text(params, text_embeddings, num_heads=H)
    out = jax.block_until_ready(out)

    ref = encode_text_ref(raw_params, text_embeddings, num_heads=H)
    assert out.shape == (B, DPROJ), out.shape
    # bf16 matmul inputs + approx reciprocal -> compare against f32 ref at 1e-2.
    assert jnp.allclose(out, ref, atol=1e-2, rtol=1e-2), \
        float(jnp.max(jnp.abs(out - ref)))

    print("KERNEL_OK")
</pallas_src>

<mosaic_0001>
module attributes {stable_mosaic.version = 11 : i64} {
  func.func @_text_encoder_kernel(%arg0: i32, %arg1: memref<1x8x32xf32, #tpu.memory_space<vmem>>, %arg2: memref<8x32xf32, #tpu.memory_space<vmem>>, %arg3: memref<1x32xf32, #tpu.memory_space<vmem>>, %arg4: memref<1x32xf32, #tpu.memory_space<vmem>>, %arg5: memref<32x32xbf16, #tpu.memory_space<vmem>>, %arg6: memref<1x32xf32, #tpu.memory_space<vmem>>, %arg7: memref<32x32xbf16, #tpu.memory_space<vmem>>, %arg8: memref<1x32xf32, #tpu.memory_space<vmem>>, %arg9: memref<32x32xbf16, #tpu.memory_space<vmem>>, %arg10: memref<1x32xf32, #tpu.memory_space<vmem>>, %arg11: memref<32x32xbf16, #tpu.memory_space<vmem>>, %arg12: memref<1x32xf32, #tpu.memory_space<vmem>>, %arg13: memref<1x32xf32, #tpu.memory_space<vmem>>, %arg14: memref<1x32xf32, #tpu.memory_space<vmem>>, %arg15: memref<32x128xbf16, #tpu.memory_space<vmem>>, %arg16: memref<1x128xf32, #tpu.memory_space<vmem>>, %arg17: memref<128x32xbf16, #tpu.memory_space<vmem>>, %arg18: memref<1x32xf32, #tpu.memory_space<vmem>>, %arg19: memref<1x32xf32, #tpu.memory_space<vmem>>, %arg20: memref<1x32xf32, #tpu.memory_space<vmem>>, %arg21: memref<32x32xbf16, #tpu.memory_space<vmem>>, %arg22: memref<1x1x32xf32, #tpu.memory_space<vmem>>) attributes {dimension_semantics = [#tpu.dimension_semantics<parallel>], iteration_bounds = array<i64: 2>, scalar_prefetch = 0 : i64, scratch_operands = 0 : i64, tpu.core_type = #tpu.core_type<tc>, window_params = [{transform_indices = @transform_0, window_bounds = array<i64: 1, 8, 32>}, {pipeline_mode = #tpu.pipeline_mode<synchronous>, transform_indices = @transform_1, window_bounds = array<i64: 8, 32>}, {pipeline_mode = #tpu.pipeline_mode<synchronous>, transform_indices = @transform_2, window_bounds = array<i64: 1, 32>}, {pipeline_mode = #tpu.pipeline_mode<synchronous>, transform_indices = @transform_3, window_bounds = array<i64: 1, 32>}, {pipeline_mode = #tpu.pipeline_mode<synchronous>, transform_indices = @transform_4, window_bounds = array<i64: 32, 32>}, {pipeline_mode = #tpu.pipeline_mode<synchronous>, transform_indices = @transform_5, window_bounds = array<i64: 1, 32>}, {pipeline_mode = #tpu.pipeline_mode<synchronous>, transform_indices = @transform_6, window_bounds = array<i64: 32, 32>}, {pipeline_mode = #tpu.pipeline_mode<synchronous>, transform_indices = @transform_7, window_bounds = array<i64: 1, 32>}, {pipeline_mode = #tpu.pipeline_mode<synchronous>, transform_indices = @transform_8, window_bounds = array<i64: 32, 32>}, {pipeline_mode = #tpu.pipeline_mode<synchronous>, transform_indices = @transform_9, window_bounds = array<i64: 1, 32>}, {pipeline_mode = #tpu.pipeline_mode<synchronous>, transform_indices = @transform_10, window_bounds = array<i64: 32, 32>}, {pipeline_mode = #tpu.pipeline_mode<synchronous>, transform_indices = @transform_11, window_bounds = array<i64: 1, 32>}, {pipeline_mode = #tpu.pipeline_mode<synchronous>, transform_indices = @transform_12, window_bounds = array<i64: 1, 32>}, {pipeline_mode = #tpu.pipeline_mode<synchronous>, transform_indices = @transform_13, window_bounds = array<i64: 1, 32>}, {pipeline_mode = #tpu.pipeline_mode<synchronous>, transform_indices = @transform_14, window_bounds = array<i64: 32, 128>}, {pipeline_mode = #tpu.pipeline_mode<synchronous>, transform_indices = @transform_15, window_bounds = array<i64: 1, 128>}, {pipeline_mode = #tpu.pipeline_mode<synchronous>, transform_indices = @transform_16, window_bounds = array<i64: 128, 32>}, {pipeline_mode = #tpu.pipeline_mode<synchronous>, transform_indices = @transform_17, window_bounds = array<i64: 1, 32>}, {pipeline_mode = #tpu.pipeline_mode<synchronous>, transform_indices = @transform_18, window_bounds = array<i64: 1, 32>}, {pipeline_mode = #tpu.pipeline_mode<synchronous>, transform_indices = @transform_19, window_bounds = array<i64: 1, 32>}, {pipeline_mode = #tpu.pipeline_mode<synchronous>, transform_indices = @transform_20, window_bounds = array<i64: 32, 32>}, {transform_indices = @transform_21, window_bounds = array<i64: 1, 1, 32>}]} {
    %c0 = arith.constant 0 : index
    %c0_0 = arith.constant 0 : index
    %c0_1 = arith.constant 0 : index
    %0 = vector.load %arg1[%c0, %c0_0, %c0_1] : memref<1x8x32xf32, #tpu.memory_space<vmem>>, vector<1x8x32xf32>
    %1 = vector.shape_cast %0 : vector<1x8x32xf32> to vector<8x32xf32>
    %c0_2 = arith.constant 0 : index
    %c0_3 = arith.constant 0 : index
    %2 = vector.load %arg2[%c0_2, %c0_3] : memref<8x32xf32, #tpu.memory_space<vmem>>, vector<8x32xf32>
    %3 = arith.addf %1, %2 : vector<8x32xf32>
    %c0_4 = arith.constant 0 : index
    %c0_5 = arith.constant 0 : index
    %4 = vector.load %arg3[%c0_4, %c0_5] : memref<1x32xf32, #tpu.memory_space<vmem>>, vector<1x32xf32>
    %c0_6 = arith.constant 0 : index
    %c0_7 = arith.constant 0 : index
    %5 = vector.load %arg4[%c0_6, %c0_7] : memref<1x32xf32, #tpu.memory_space<vmem>>, vector<1x32xf32>
    %cst = arith.constant dense<0.000000e+00> : vector<8xf32>
    %6 = vector.multi_reduction <add>, %3, %cst [1] : vector<8x32xf32> to vector<8xf32>
    %7 = vector.shape_cast %6 : vector<8xf32> to vector<8x1xf32>
    %cst_8 = arith.constant 3.200000e+01 : f32
    %8 = vector.broadcast %cst_8 : f32 to vector<8x1xf32>
    %9 = arith.divf %7, %8 : vector<8x1xf32>
    %10 = vector.broadcast %9 : vector<8x1xf32> to vector<8x32xf32>
    %11 = arith.subf %3, %10 : vector<8x32xf32>
    %12 = arith.mulf %11, %11 : vector<8x32xf32>
    %cst_9 = arith.constant dense<0.000000e+00> : vector<8xf32>
    %13 = vector.multi_reduction <add>, %12, %cst_9 [1] : vector<8x32xf32> to vector<8xf32>
    %14 = vector.shape_cast %13 : vector<8xf32> to vector<8x1xf32>
    %cst_10 = arith.constant 3.200000e+01 : f32
    %15 = vector.broadcast %cst_10 : f32 to vector<8x1xf32>
    %16 = arith.divf %14, %15 : vector<8x1xf32>
    %17 = vector.broadcast %9 : vector<8x1xf32> to vector<8x32xf32>
    %18 = arith.subf %3, %17 : vector<8x32xf32>
    %cst_11 = arith.constant 9.99999974E-6 : f32
    %19 = vector.broadcast %cst_11 : f32 to vector<8x1xf32>
    %20 = arith.addf %16, %19 : vector<8x1xf32>
    %21 = math.rsqrt %20 : vector<8x1xf32>
    %22 = vector.broadcast %21 : vector<8x1xf32> to vector<8x32xf32>
    %23 = arith.mulf %18, %22 : vector<8x32xf32>
    %24 = vector.broadcast %4 : vector<1x32xf32> to vector<8x32xf32>
    %25 = arith.mulf %23, %24 : vector<8x32xf32>
    %26 = vector.broadcast %5 : vector<1x32xf32> to vector<8x32xf32>
    %27 = arith.addf %25, %26 : vector<8x32xf32>
    %28 = arith.truncf %27 : vector<8x32xf32> to vector<8x32xbf16>
    %c0_12 = arith.constant 0 : index
    %c0_13 = arith.constant 0 : index
    %29 = vector.load %arg7[%c0_12, %c0_13] : memref<32x32xbf16, #tpu.memory_space<vmem>>, vector<32x32xbf16>
    %cst_14 = arith.constant dense<0.000000e+00> : vector<8x32xf32>
    %30 = tpu.matmul %28, %29, %cst_14 {dimension_numbers = #tpu.dot_dimension_numbers<[1], [0], [0], [1], [0, 0, 1, 1], [], []>} : vector<8x32xbf16>, vector<32x32xbf16>, vector<8x32xf32> -> vector<8x32xf32>
    %c0_15 = arith.constant 0 : index
    %c0_16 = arith.constant 0 : index
    %31 = vector.load %arg8[%c0_15, %c0_16] : memref<1x32xf32, #tpu.memory_space<vmem>>, vector<1x32xf32>
    %32 = vector.broadcast %31 : vector<1x32xf32> to vector<8x32xf32>
    %33 = arith.addf %30, %32 : vector<8x32xf32>
    %34 = arith.truncf %33 : vector<8x32xf32> to vector<8x32xbf16>
    %c0_17 = arith.constant 0 : index
    %c0_18 = arith.constant 0 : index
    %35 = vector.load %arg9[%c0_17, %c0_18] : memref<32x32xbf16, #tpu.memory_space<vmem>>, vector<32x32xbf16>
    %cst_19 = arith.constant dense<0.000000e+00> : vector<8x32xf32>
    %36 = tpu.matmul %28, %35, %cst_19 {dimension_numbers = #tpu.dot_dimension_numbers<[1], [0], [0], [1], [0, 0, 1, 1], [], []>} : vector<8x32xbf16>, vector<32x32xbf16>, vector<8x32xf32> -> vector<8x32xf32>
    %c0_20 = arith.constant 0 : index
    %c0_21 = arith.constant 0 : index
    %37 = vector.load %arg10[%c0_20, %c0_21] : memref<1x32xf32, #tpu.memory_space<vmem>>, vector<1x32xf32>
    %38 = vector.broadcast %37 : vector<1x32xf32> to vector<8x32xf32>
    %39 = arith.addf %36, %38 : vector<8x32xf32>
    %40 = arith.truncf %39 : vector<8x32xf32> to vector<8x32xbf16>
    %c0_22 = arith.constant 0 : index
    %c0_23 = arith.constant 0 : index
    %41 = vector.load %arg5[%c0_22, %c0_23] : memref<32x32xbf16, #tpu.memory_space<vmem>>, vector<32x32xbf16>
    %cst_24 = arith.constant dense<0.000000e+00> : vector<8x32xf32>
    %42 = tpu.matmul %28, %41, %cst_24 {dimension_numbers = #tpu.dot_dimension_numbers<[1], [0], [0], [1], [0, 0, 1, 1], [], []>} : vector<8x32xbf16>, vector<32x32xbf16>, vector<8x32xf32> -> vector<8x32xf32>
    %c0_25 = arith.constant 0 : index
    %c0_26 = arith.constant 0 : index
    %43 = vector.load %arg6[%c0_25, %c0_26] : memref<1x32xf32, #tpu.memory_space<vmem>>, vector<1x32xf32>
    %44 = vector.broadcast %43 : vector<1x32xf32> to vector<8x32xf32>
    %45 = arith.addf %42, %44 : vector<8x32xf32>
    %cst_27 = arith.constant 0.353553385 : f32
    %46 = vector.broadcast %cst_27 : f32 to vector<8x32xf32>
    %47 = arith.mulf %45, %46 : vector<8x32xf32>
    %48 = vector.extract_strided_slice %47 {offsets = [0, 0], sizes = [8, 8], strides = [1, 1]} : vector<8x32xf32> to vector<8x8xf32>
    %49 = arith.truncf %48 : vector<8x8xf32> to vector<8x8xbf16>
    %50 = vector.extract_strided_slice %34 {offsets = [0, 0], sizes = [8, 8], strides = [1, 1]} : vector<8x32xbf16> to vector<8x8xbf16>
    %51 = vector.extract_strided_slice %40 {offsets = [0, 0], sizes = [8, 8], strides = [1, 1]} : vector<8x32xbf16> to vector<8x8xbf16>
    %cst_28 = arith.constant dense<0.000000e+00> : vector<8x8xf32>
    %52 = tpu.matmul %49, %50, %cst_28 {dimension_numbers = #tpu.dot_dimension_numbers<[1], [1], [0], [0], [0, 0, 1, 0], [], []>} : vector<8x8xbf16>, vector<8x8xbf16>, vector<8x8xf32> -> vector<8x8xf32>
    %cst_29 = arith.constant dense<0xFF800000> : vector<8xf32>
    %53 = vector.multi_reduction <maximumf>, %52, %cst_29 [1] : vector<8x8xf32> to vector<8xf32>
    %54 = vector.shape_cast %53 : vector<8xf32> to vector<8x1xf32>
    %55 = vector.broadcast %54 : vector<8x1xf32> to vector<8x8xf32>
    %56 = arith.subf %52, %55 : vector<8x8xf32>
    %57 = math.exp %56 : vector<8x8xf32>
    %cst_30 = arith.constant dense<0.000000e+00> : vector<8xf32>
    %58 = vector.multi_reduction <add>, %57, %cst_30 [1] : vector<8x8xf32> to vector<8xf32>
    %59 = vector.shape_cast %58 : vector<8xf32> to vector<8x1xf32>
    %60 = tpu.reciprocal %59 {approx = true} : vector<8x1xf32> -> vector<8x1xf32>
    %61 = vector.broadcast %60 : vector<8x1xf32> to vector<8x8xf32>
    %62 = arith.mulf %57, %61 : vector<8x8xf32>
    %63 = arith.truncf %62 : vector<8x8xf32> to vector<8x8xbf16>
    %cst_31 = arith.constant dense<0.000000e+00> : vector<8x8xf32>
    %64 = tpu.matmul %63, %51, %cst_31 {dimension_numbers = #tpu.dot_dimension_numbers<[1], [0], [0], [1], [0, 0, 1, 1], [], []>} : vector<8x8xbf16>, vector<8x8xbf16>, vector<8x8xf32> -> vector<8x8xf32>
    %65 = vector.extract_strided_slice %47 {offsets = [0, 8], sizes = [8, 8], strides = [1, 1]} : vector<8x32xf32> to vector<8x8xf32>
    %66 = arith.truncf %65 : vector<8x8xf32> to vector<8x8xbf16>
    %67 = vector.extract_strided_slice %34 {offsets = [0, 8], sizes = [8, 8], strides = [1, 1]} : vector<8x32xbf16> to vector<8x8xbf16>
    %68 = vector.extract_strided_slice %40 {offsets = [0, 8], sizes = [8, 8], strides = [1, 1]} : vector<8x32xbf16> to vector<8x8xbf16>
    %cst_32 = arith.constant dense<0.000000e+00> : vector<8x8xf32>
    %69 = tpu.matmul %66, %67, %cst_32 {dimension_numbers = #tpu.dot_dimension_numbers<[1], [1], [0], [0], [0, 0, 1, 0], [], []>} : vector<8x8xbf16>, vector<8x8xbf16>, vector<8x8xf32> -> vector<8x8xf32>
    %cst_33 = arith.constant dense<0xFF800000> : vector<8xf32>
    %70 = vector.multi_reduction <maximumf>, %69, %cst_33 [1] : vector<8x8xf32> to vector<8xf32>
    %71 = vector.shape_cast %70 : vector<8xf32> to vector<8x1xf32>
    %72 = vector.broadcast %71 : vector<8x1xf32> to vector<8x8xf32>
    %73 = arith.subf %69, %72 : vector<8x8xf32>
    %74 = math.exp %73 : vector<8x8xf32>
    %cst_34 = arith.constant dense<0.000000e+00> : vector<8xf32>
    %75 = vector.multi_reduction <add>, %74, %cst_34 [1] : vector<8x8xf32> to vector<8xf32>
    %76 = vector.shape_cast %75 : vector<8xf32> to vector<8x1xf32>
    %77 = tpu.reciprocal %76 {approx = true} : vector<8x1xf32> -> vector<8x1xf32>
    %78 = vector.broadcast %77 : vector<8x1xf32> to vector<8x8xf32>
    %79 = arith.mulf %74, %78 : vector<8x8xf32>
    %80 = arith.truncf %79 : vector<8x8xf32> to vector<8x8xbf16>
    %cst_35 = arith.constant dense<0.000000e+00> : vector<8x8xf32>
    %81 = tpu.matmul %80, %68, %cst_35 {dimension_numbers = #tpu.dot_dimension_numbers<[1], [0], [0], [1], [0, 0, 1, 1], [], []>} : vector<8x8xbf16>, vector<8x8xbf16>, vector<8x8xf32> -> vector<8x8xf32>
    %82 = vector.extract_strided_slice %47 {offsets = [0, 16], sizes = [8, 8], strides = [1, 1]} : vector<8x32xf32> to vector<8x8xf32>
    %83 = arith.truncf %82 : vector<8x8xf32> to vector<8x8xbf16>
    %84 = vector.extract_strided_slice %34 {offsets = [0, 16], sizes = [8, 8], strides = [1, 1]} : vector<8x32xbf16> to vector<8x8xbf16>
    %85 = vector.extract_strided_slice %40 {offsets = [0, 16], sizes = [8, 8], strides = [1, 1]} : vector<8x32xbf16> to vector<8x8xbf16>
    %cst_36 = arith.constant dense<0.000000e+00> : vector<8x8xf32>
    %86 = tpu.matmul %83, %84, %cst_36 {dimension_numbers = #tpu.dot_dimension_numbers<[1], [1], [0], [0], [0, 0, 1, 0], [], []>} : vector<8x8xbf16>, vector<8x8xbf16>, vector<8x8xf32> -> vector<8x8xf32>
    %cst_37 = arith.constant dense<0xFF800000> : vector<8xf32>
    %87 = vector.multi_reduction <maximumf>, %86, %cst_37 [1] : vector<8x8xf32> to vector<8xf32>
    %88 = vector.shape_cast %87 : vector<8xf32> to vector<8x1xf32>
    %89 = vector.broadcast %88 : vector<8x1xf32> to vector<8x8xf32>
    %90 = arith.subf %86, %89 : vector<8x8xf32>
    %91 = math.exp %90 : vector<8x8xf32>
    %cst_38 = arith.constant dense<0.000000e+00> : vector<8xf32>
    %92 = vector.multi_reduction <add>, %91, %cst_38 [1] : vector<8x8xf32> to vector<8xf32>
    %93 = vector.shape_cast %92 : vector<8xf32> to vector<8x1xf32>
    %94 = tpu.reciprocal %93 {approx = true} : vector<8x1xf32> -> vector<8x1xf32>
    %95 = vector.broadcast %94 : vector<8x1xf32> to vector<8x8xf32>
    %96 = arith.mulf %91, %95 : vector<8x8xf32>
    %97 = arith.truncf %96 : vector<8x8xf32> to vector<8x8xbf16>
    %cst_39 = arith.constant dense<0.000000e+00> : vector<8x8xf32>
    %98 = tpu.matmul %97, %85, %cst_39 {dimension_numbers = #tpu.dot_dimension_numbers<[1], [0], [0], [1], [0, 0, 1, 1], [], []>} : vector<8x8xbf16>, vector<8x8xbf16>, vector<8x8xf32> -> vector<8x8xf32>
    %99 = vector.extract_strided_slice %47 {offsets = [0, 24], sizes = [8, 8], strides = [1, 1]} : vector<8x32xf32> to vector<8x8xf32>
    %100 = arith.truncf %99 : vector<8x8xf32> to vector<8x8xbf16>
    %101 = vector.extract_strided_slice %34 {offsets = [0, 24], sizes = [8, 8], strides = [1, 1]} : vector<8x32xbf16> to vector<8x8xbf16>
    %102 = vector.extract_strided_slice %40 {offsets = [0, 24], sizes = [8, 8], strides = [1, 1]} : vector<8x32xbf16> to vector<8x8xbf16>
    %cst_40 = arith.constant dense<0.000000e+00> : vector<8x8xf32>
    %103 = tpu.matmul %100, %101, %cst_40 {dimension_numbers = #tpu.dot_dimension_numbers<[1], [1], [0], [0], [0, 0, 1, 0], [], []>} : vector<8x8xbf16>, vector<8x8xbf16>, vector<8x8xf32> -> vector<8x8xf32>
    %cst_41 = arith.constant dense<0xFF800000> : vector<8xf32>
    %104 = vector.multi_reduction <maximumf>, %103, %cst_41 [1] : vector<8x8xf32> to vector<8xf32>
    %105 = vector.shape_cast %104 : vector<8xf32> to vector<8x1xf32>
    %106 = vector.broadcast %105 : vector<8x1xf32> to vector<8x8xf32>
    %107 = arith.subf %103, %106 : vector<8x8xf32>
    %108 = math.exp %107 : vector<8x8xf32>
    %cst_42 = arith.constant dense<0.000000e+00> : vector<8xf32>
    %109 = vector.multi_reduction <add>, %108, %cst_42 [1] : vector<8x8xf32> to vector<8xf32>
    %110 = vector.shape_cast %109 : vector<8xf32> to vector<8x1xf32>
    %111 = tpu.reciprocal %110 {approx = true} : vector<8x1xf32> -> vector<8x1xf32>
    %112 = vector.broadcast %111 : vector<8x1xf32> to vector<8x8xf32>
    %113 = arith.mulf %108, %112 : vector<8x8xf32>
    %114 = arith.truncf %113 : vector<8x8xf32> to vector<8x8xbf16>
    %cst_43 = arith.constant dense<0.000000e+00> : vector<8x8xf32>
    %115 = tpu.matmul %114, %102, %cst_43 {dimension_numbers = #tpu.dot_dimension_numbers<[1], [0], [0], [1], [0, 0, 1, 1], [], []>} : vector<8x8xbf16>, vector<8x8xbf16>, vector<8x8xf32> -> vector<8x8xf32>
    %116 = tpu.concatenate %64, %81, %98, %115 in 1 : vector<8x8xf32>, vector<8x8xf32>, vector<8x8xf32>, vector<8x8xf32> -> vector<8x32xf32>
    %117 = arith.truncf %116 : vector<8x32xf32> to vector<8x32xbf16>
    %c0_44 = arith.constant 0 : index
    %c0_45 = arith.constant 0 : index
    %118 = vector.load %arg11[%c0_44, %c0_45] : memref<32x32xbf16, #tpu.memory_space<vmem>>, vector<32x32xbf16>
    %cst_46 = arith.constant dense<0.000000e+00> : vector<8x32xf32>
    %119 = tpu.matmul %117, %118, %cst_46 {dimension_numbers = #tpu.dot_dimension_numbers<[1], [0], [0], [1], [0, 0, 1, 1], [], []>} : vector<8x32xbf16>, vector<32x32xbf16>, vector<8x32xf32> -> vector<8x32xf32>
    %c0_47 = arith.constant 0 : index
    %c0_48 = arith.constant 0 : index
    %120 = vector.load %arg12[%c0_47, %c0_48] : memref<1x32xf32, #tpu.memory_space<vmem>>, vector<1x32xf32>
    %121 = vector.broadcast %120 : vector<1x32xf32> to vector<8x32xf32>
    %122 = arith.addf %119, %121 : vector<8x32xf32>
    %123 = arith.addf %3, %122 : vector<8x32xf32>
    %c0_49 = arith.constant 0 : index
    %c0_50 = arith.constant 0 : index
    %124 = vector.load %arg13[%c0_49, %c0_50] : memref<1x32xf32, #tpu.memory_space<vmem>>, vector<1x32xf32>
    %c0_51 = arith.constant 0 : index
    %c0_52 = arith.constant 0 : index
    %125 = vector.load %arg14[%c0_51, %c0_52] : memref<1x32xf32, #tpu.memory_space<vmem>>, vector<1x32xf32>
    %cst_53 = arith.constant dense<0.000000e+00> : vector<8xf32>
    %126 = vector.multi_reduction <add>, %123, %cst_53 [1] : vector<8x32xf32> to vector<8xf32>
    %127 = vector.shape_cast %126 : vector<8xf32> to vector<8x1xf32>
    %cst_54 = arith.constant 3.200000e+01 : f32
    %128 = vector.broadcast %cst_54 : f32 to vector<8x1xf32>
    %129 = arith.divf %127, %128 : vector<8x1xf32>
    %130 = vector.broadcast %129 : vector<8x1xf32> to vector<8x32xf32>
    %131 = arith.subf %123, %130 : vector<8x32xf32>
    %132 = arith.mulf %131, %131 : vector<8x32xf32>
    %cst_55 = arith.constant dense<0.000000e+00> : vector<8xf32>
    %133 = vector.multi_reduction <add>, %132, %cst_55 [1] : vector<8x32xf32> to vector<8xf32>
    %134 = vector.shape_cast %133 : vector<8xf32> to vector<8x1xf32>
    %cst_56 = arith.constant 3.200000e+01 : f32
    %135 = vector.broadcast %cst_56 : f32 to vector<8x1xf32>
    %136 = arith.divf %134, %135 : vector<8x1xf32>
    %137 = vector.broadcast %129 : vector<8x1xf32> to vector<8x32xf32>
    %138 = arith.subf %123, %137 : vector<8x32xf32>
    %cst_57 = arith.constant 9.99999974E-6 : f32
    %139 = vector.broadcast %cst_57 : f32 to vector<8x1xf32>
    %140 = arith.addf %136, %139 : vector<8x1xf32>
    %141 = math.rsqrt %140 : vector<8x1xf32>
    %142 = vector.broadcast %141 : vector<8x1xf32> to vector<8x32xf32>
    %143 = arith.mulf %138, %142 : vector<8x32xf32>
    %144 = vector.broadcast %124 : vector<1x32xf32> to vector<8x32xf32>
    %145 = arith.mulf %143, %144 : vector<8x32xf32>
    %146 = vector.broadcast %125 : vector<1x32xf32> to vector<8x32xf32>
    %147 = arith.addf %145, %146 : vector<8x32xf32>
    %148 = arith.truncf %147 : vector<8x32xf32> to vector<8x32xbf16>
    %c0_58 = arith.constant 0 : index
    %c0_59 = arith.constant 0 : index
    %149 = vector.load %arg15[%c0_58, %c0_59] : memref<32x128xbf16, #tpu.memory_space<vmem>>, vector<32x128xbf16>
    %cst_60 = arith.constant dense<0.000000e+00> : vector<8x128xf32>
    %150 = tpu.matmul %148, %149, %cst_60 {dimension_numbers = #tpu.dot_dimension_numbers<[1], [0], [0], [1], [0, 0, 1, 1], [], []>} : vector<8x32xbf16>, vector<32x128xbf16>, vector<8x128xf32> -> vector<8x128xf32>
    %c0_61 = arith.constant 0 : index
    %c0_62 = arith.constant 0 : index
    %151 = vector.load %arg16[%c0_61, %c0_62] : memref<1x128xf32, #tpu.memory_space<vmem>>, vector<1x128xf32>
    %152 = vector.broadcast %151 : vector<1x128xf32> to vector<8x128xf32>
    %153 = arith.addf %150, %152 : vector<8x128xf32>
    %cst_63 = arith.constant 1.702000e+00 : f32
    %154 = vector.broadcast %cst_63 : f32 to vector<8x128xf32>
    %155 = arith.mulf %154, %153 : vector<8x128xf32>
    %156 = arith.negf %155 : vector<8x128xf32>
    %157 = math.exp %156 : vector<8x128xf32>
    %cst_64 = arith.constant 1.000000e+00 : f32
    %158 = vector.broadcast %cst_64 : f32 to vector<8x128xf32>
    %159 = arith.addf %158, %157 : vector<8x128xf32>
    %160 = arith.divf %158, %159 : vector<8x128xf32>
    %161 = arith.mulf %153, %160 : vector<8x128xf32>
    %162 = arith.truncf %161 : vector<8x128xf32> to vector<8x128xbf16>
    %c0_65 = arith.constant 0 : index
    %c0_66 = arith.constant 0 : index
    %163 = vector.load %arg17[%c0_65, %c0_66] : memref<128x32xbf16, #tpu.memory_space<vmem>>, vector<128x32xbf16>
    %cst_67 = arith.constant dense<0.000000e+00> : vector<8x32xf32>
    %164 = tpu.matmul %162, %163, %cst_67 {dimension_numbers = #tpu.dot_dimension_numbers<[1], [0], [0], [1], [0, 0, 1, 1], [], []>} : vector<8x128xbf16>, vector<128x32xbf16>, vector<8x32xf32> -> vector<8x32xf32>
    %c0_68 = arith.constant 0 : index
    %c0_69 = arith.constant 0 : index
    %165 = vector.load %arg18[%c0_68, %c0_69] : memref<1x32xf32, #tpu.memory_space<vmem>>, vector<1x32xf32>
    %166 = vector.broadcast %165 : vector<1x32xf32> to vector<8x32xf32>
    %167 = arith.addf %164, %166 : vector<8x32xf32>
    %168 = arith.addf %123, %167 : vector<8x32xf32>
    %c0_70 = arith.constant 0 : index
    %c0_71 = arith.constant 0 : index
    %169 = vector.load %arg19[%c0_70, %c0_71] : memref<1x32xf32, #tpu.memory_space<vmem>>, vector<1x32xf32>
    %c0_72 = arith.constant 0 : index
    %c0_73 = arith.constant 0 : index
    %170 = vector.load %arg20[%c0_72, %c0_73] : memref<1x32xf32, #tpu.memory_space<vmem>>, vector<1x32xf32>
    %cst_74 = arith.constant dense<0.000000e+00> : vector<8xf32>
    %171 = vector.multi_reduction <add>, %168, %cst_74 [1] : vector<8x32xf32> to vector<8xf32>
    %172 = vector.shape_cast %171 : vector<8xf32> to vector<8x1xf32>
    %cst_75 = arith.constant 3.200000e+01 : f32
    %173 = vector.broadcast %cst_75 : f32 to vector<8x1xf32>
    %174 = arith.divf %172, %173 : vector<8x1xf32>
    %175 = vector.broadcast %174 : vector<8x1xf32> to vector<8x32xf32>
    %176 = arith.subf %168, %175 : vector<8x32xf32>
    %177 = arith.mulf %176, %176 : vector<8x32xf32>
    %cst_76 = arith.constant dense<0.000000e+00> : vector<8xf32>
    %178 = vector.multi_reduction <add>, %177, %cst_76 [1] : vector<8x32xf32> to vector<8xf32>
    %179 = vector.shape_cast %178 : vector<8xf32> to vector<8x1xf32>
    %cst_77 = arith.constant 3.200000e+01 : f32
    %180 = vector.broadcast %cst_77 : f32 to vector<8x1xf32>
    %181 = arith.divf %179, %180 : vector<8x1xf32>
    %182 = vector.broadcast %174 : vector<8x1xf32> to vector<8x32xf32>
    %183 = arith.subf %168, %182 : vector<8x32xf32>
    %cst_78 = arith.constant 9.99999974E-6 : f32
    %184 = vector.broadcast %cst_78 : f32 to vector<8x1xf32>
    %185 = arith.addf %181, %184 : vector<8x1xf32>
    %186 = math.rsqrt %185 : vector<8x1xf32>
    %187 = vector.broadcast %186 : vector<8x1xf32> to vector<8x32xf32>
    %188 = arith.mulf %183, %187 : vector<8x32xf32>
    %189 = vector.broadcast %169 : vector<1x32xf32> to vector<8x32xf32>
    %190 = arith.mulf %188, %189 : vector<8x32xf32>
    %191 = vector.broadcast %170 : vector<1x32xf32> to vector<8x32xf32>
    %192 = arith.addf %190, %191 : vector<8x32xf32>
    %193 = arith.truncf %192 : vector<8x32xf32> to vector<8x32xbf16>
    %c0_79 = arith.constant 0 : index
    %c0_80 = arith.constant 0 : index
    %194 = vector.load %arg21[%c0_79, %c0_80] : memref<32x32xbf16, #tpu.memory_space<vmem>>, vector<32x32xbf16>
    %cst_81 = arith.constant dense<0.000000e+00> : vector<8x32xf32>
    %195 = tpu.matmul %193, %194, %cst_81 {dimension_numbers = #tpu.dot_dimension_numbers<[1], [0], [0], [1], [0, 0, 1, 1], [], []>} : vector<8x32xbf16>, vector<32x32xbf16>, vector<8x32xf32> -> vector<8x32xf32>
    %196 = vector.extract_strided_slice %195 {offsets = [7, 0], sizes = [1, 32], strides = [1, 1]} : vector<8x32xf32> to vector<1x32xf32>
    %c0_82 = arith.constant 0 : index
    %c0_83 = arith.constant 0 : index
    %c0_84 = arith.constant 0 : index
    %197 = vector.load %arg22[%c0_82, %c0_83, %c0_84] : memref<1x1x32xf32, #tpu.memory_space<vmem>>, vector<1x1x32xf32>
    %198 = vector.shape_cast %197 : vector<1x1x32xf32> to vector<1x32xf32>
    %199 = vector.shape_cast %196 : vector<1x32xf32> to vector<1x1x32xf32>
    tpu.vector_store %arg22[%c0_82, %c0_83, %c0_84], %199 {strides = array<i32>} : memref<1x1x32xf32, #tpu.memory_space<vmem>>, vector<1x1x32xf32>,
    return
  }
  func.func @transform_0(%arg0: i32) -> (i32, i32, i32) {
    %c0_i32 = arith.constant 0 : i32
    %c0_i32_0 = arith.constant 0 : i32
    %c0_i32_1 = arith.constant 0 : i32
    return %arg0, %c0_i32, %c0_i32_0 : i32, i32, i32
  }
  func.func @transform_1(%arg0: i32) -> (i32, i32) {
    %c0_i32 = arith.constant 0 : i32
    %c0_i32_0 = arith.constant 0 : i32
    %c0_i32_1 = arith.constant 0 : i32
    return %c0_i32, %c0_i32_0 : i32, i32
  }
  func.func @transform_2(%arg0: i32) -> (i32, i32) {
    %c0_i32 = arith.constant 0 : i32
    %c0_i32_0 = arith.constant 0 : i32
    %c0_i32_1 = arith.constant 0 : i32
    return %c0_i32, %c0_i32_0 : i32, i32
  }
  func.func @transform_3(%arg0: i32) -> (i32, i32) {
    %c0_i32 = arith.constant 0 : i32
    %c0_i32_0 = arith.constant 0 : i32
    %c0_i32_1 = arith.constant 0 : i32
    return %c0_i32, %c0_i32_0 : i32, i32
  }
  func.func @transform_4(%arg0: i32) -> (i32, i32) {
    %c0_i32 = arith.constant 0 : i32
    %c0_i32_0 = arith.constant 0 : i32
    %c0_i32_1 = arith.constant 0 : i32
    return %c0_i32, %c0_i32_0 : i32, i32
  }
  func.func @transform_5(%arg0: i32) -> (i32, i32) {
    %c0_i32 = arith.constant 0 : i32
    %c0_i32_0 = arith.constant 0 : i32
    %c0_i32_1 = arith.constant 0 : i32
    return %c0_i32, %c0_i32_0 : i32, i32
  }
  func.func @transform_6(%arg0: i32) -> (i32, i32) {
    %c0_i32 = arith.constant 0 : i32
    %c0_i32_0 = arith.constant 0 : i32
    %c0_i32_1 = arith.constant 0 : i32
    return %c0_i32, %c0_i32_0 : i32, i32
  }
  func.func @transform_7(%arg0: i32) -> (i32, i32) {
    %c0_i32 = arith.constant 0 : i32
    %c0_i32_0 = arith.constant 0 : i32
    %c0_i32_1 = arith.constant 0 : i32
    return %c0_i32, %c0_i32_0 : i32, i32
  }
  func.func @transform_8(%arg0: i32) -> (i32, i32) {
    %c0_i32 = arith.constant 0 : i32
    %c0_i32_0 = arith.constant 0 : i32
    %c0_i32_1 = arith.constant 0 : i32
    return %c0_i32, %c0_i32_0 : i32, i32
  }
  func.func @transform_9(%arg0: i32) -> (i32, i32) {
    %c0_i32 = arith.constant 0 : i32
    %c0_i32_0 = arith.constant 0 : i32
    %c0_i32_1 = arith.constant 0 : i32
    return %c0_i32, %c0_i32_0 : i32, i32
  }
  func.func @transform_10(%arg0: i32) -> (i32, i32) {
    %c0_i32 = arith.constant 0 : i32
    %c0_i32_0 = arith.constant 0 : i32
    %c0_i32_1 = arith.constant 0 : i32
    return %c0_i32, %c0_i32_0 : i32, i32
  }
  func.func @transform_11(%arg0: i32) -> (i32, i32) {
    %c0_i32 = arith.constant 0 : i32
    %c0_i32_0 = arith.constant 0 : i32
    %c0_i32_1 = arith.constant 0 : i32
    return %c0_i32, %c0_i32_0 : i32, i32
  }
  func.func @transform_12(%arg0: i32) -> (i32, i32) {
    %c0_i32 = arith.constant 0 : i32
    %c0_i32_0 = arith.constant 0 : i32
    %c0_i32_1 = arith.constant 0 : i32
    return %c0_i32, %c0_i32_0 : i32, i32
  }
  func.func @transform_13(%arg0: i32) -> (i32, i32) {
    %c0_i32 = arith.constant 0 : i32
    %c0_i32_0 = arith.constant 0 : i32
    %c0_i32_1 = arith.constant 0 : i32
    return %c0_i32, %c0_i32_0 : i32, i32
  }
  func.func @transform_14(%arg0: i32) -> (i32, i32) {
    %c0_i32 = arith.constant 0 : i32
    %c0_i32_0 = arith.constant 0 : i32
    %c0_i32_1 = arith.constant 0 : i32
    return %c0_i32, %c0_i32_0 : i32, i32
  }
  func.func @transform_15(%arg0: i32) -> (i32, i32) {
    %c0_i32 = arith.constant 0 : i32
    %c0_i32_0 = arith.constant 0 : i32
    %c0_i32_1 = arith.constant 0 : i32
    return %c0_i32, %c0_i32_0 : i32, i32
  }
  func.func @transform_16(%arg0: i32) -> (i32, i32) {
    %c0_i32 = arith.constant 0 : i32
    %c0_i32_0 = arith.constant 0 : i32
    %c0_i32_1 = arith.constant 0 : i32
    return %c0_i32, %c0_i32_0 : i32, i32
  }
  func.func @transform_17(%arg0: i32) -> (i32, i32) {
    %c0_i32 = arith.constant 0 : i32
    %c0_i32_0 = arith.constant 0 : i32
    %c0_i32_1 = arith.constant 0 : i32
    return %c0_i32, %c0_i32_0 : i32, i32
  }
  func.func @transform_18(%arg0: i32) -> (i32, i32) {
    %c0_i32 = arith.constant 0 : i32
    %c0_i32_0 = arith.constant 0 : i32
    %c0_i32_1 = arith.constant 0 : i32
    return %c0_i32, %c0_i32_0 : i32, i32
  }
  func.func @transform_19(%arg0: i32) -> (i32, i32) {
    %c0_i32 = arith.constant 0 : i32
    %c0_i32_0 = arith.constant 0 : i32
    %c0_i32_1 = arith.constant 0 : i32
    return %c0_i32, %c0_i32_0 : i32, i32
  }
  func.func @transform_20(%arg0: i32) -> (i32, i32) {
    %c0_i32 = arith.constant 0 : i32
    %c0_i32_0 = arith.constant 0 : i32
    %c0_i32_1 = arith.constant 0 : i32
    return %c0_i32, %c0_i32_0 : i32, i32
  }
  func.func @transform_21(%arg0: i32) -> (i32, i32, i32) {
    %c0_i32 = arith.constant 0 : i32
    %c0_i32_0 = arith.constant 0 : i32
    %c0_i32_1 = arith.constant 0 : i32
    return %arg0, %c0_i32, %c0_i32_0 : i32, i32, i32
  }
}

</mosaic_0001>

<bundles_post_ra>
// kernel: tpu_custom_call.1
= control target key start
LH: loop header
LB: loop body
LE: loop exit
PB: predicated region body
PF: predicated region fallthrough
CT: control target
= control target key end

     0   :  { %s3298_s0 = inlined_call_operand.vmem [shape: f32[2,8,32], index: 0, kind: input, shape index: {}]   ;;  %s3299_s1 = inlined_call_operand.hbm [shape: f32[8,32], index: 1, kind: input, shape index: {}]   ;;  %s3300_s2 = inlined_call_operand.vmem [shape: f32[1,32], index: 2, kind: input, shape index: {}]   ;;  %s3301_s3 = inlined_call_operand.hbm [shape: f32[1,32], index: 3, kind: input, shape index: {}]   ;;  %s3302_s4 = inlined_call_operand.vmem [shape: bf16[32,32], index: 4, kind: input, shape index: {}]   ;;  %s3303_s5 = inlined_call_operand.hbm [shape: f32[1,32], index: 5, kind: input, shape index: {}]   ;;  %s3304_s6 = inlined_call_operand.vmem [shape: bf16[32,32], index: 6, kind: input, shape index: {}]   ;;  %s3305_s7 = inlined_call_operand.hbm [shape: f32[1,32], index: 7, kind: input, shape index: {}]   ;;  %s3306_s8 = inlined_call_operand.vmem [shape: bf16[32,32], index: 8, kind: input, shape index: {}]   ;;  %s3307_s9 = inlined_call_operand.hbm [shape: f32[1,32], index: 9, kind: input, shape index: {}]   ;;  %s3308_s10 = inlined_call_operand.vmem [shape: bf16[32,32], index: 10, kind: input, shape index: {}]   ;;  %s3309_s11 = inlined_call_operand.hbm [shape: f32[1,32], index: 11, kind: input, shape index: {}]   ;;  %s3310_s12 = inlined_call_operand.hbm [shape: f32[1,32], index: 12, kind: input, shape index: {}]   ;;  %s3311_s13 = inlined_call_operand.hbm [shape: f32[1,32], index: 13, kind: input, shape index: {}]   ;;  %s3312_s14 = inlined_call_operand.vmem [shape: bf16[32,128], index: 14, kind: input, shape index: {}]   ;;  %s3313_s15 = inlined_call_operand.vmem [shape: f32[1,128], index: 15, kind: input, shape index: {}]   ;;  %s3314_s16 = inlined_call_operand.vmem [shape: bf16[128,32], index: 16, kind: input, shape index: {}]   ;;  %s3315_s17 = inlined_call_operand.vmem [shape: f32[1,32], index: 17, kind: input, shape index: {}]   ;;  %s3316_s18 = inlined_call_operand.vmem [shape: f32[1,32], index: 18, kind: input, shape index: {}]   ;;  %s3317_s19 = inlined_call_operand.vmem [shape: f32[1,32], index: 19, kind: input, shape index: {}]   ;;  %s3318_s20 = inlined_call_operand.vmem [shape: bf16[32,32], index: 20, kind: input, shape index: {}]   ;;  %s3319_s21 = inlined_call_operand.hbm [shape: f32[2,1,32], index: 21, kind: output, shape index: {}]  }
   0x1   :  { %3337 = sst [smem:[#allocation30_spill]] %s3298_s0 }
   0x2   :  { %3338 = sst [smem:[#allocation31_spill]] %s3299_s1 }
   0x3   :  { %3339 = sst [smem:[#allocation32_spill]] %s3300_s2 }
   0x4   :  { %3340 = sst [smem:[#allocation33_spill]] %s3301_s3 }
   0x5   :  { %3341 = sst [smem:[#allocation34_spill]] %s3302_s4 }
   0x6   :  { %3342 = sst [smem:[#allocation35_spill]] %s3303_s5 }
   0x7   :  { %3343 = sst [smem:[#allocation36_spill]] %s3305_s7 }
   0x8   :  { %3344 = sst [smem:[#allocation37_spill]] %s3309_s11 }
   0x9   :  { %3345 = sst [smem:[#allocation38_spill]] %s3316_s18 }
   0xa   :  { %3346 = sst [smem:[#allocation39_spill]] %s3317_s19 }
   0xb   :  { %3347 = sst [smem:[#allocation40_spill]] %s3319_s21 }
   0xc   :  { %26 = vsyncpa [#allocation3], 0 }
   0xd   :  { %27 = vsyncpa [#allocation6], 0 }
   0xe   :  { %28 = vsyncpa [#allocation9], 0 }
   0xf   :  { %29 = vsyncpa [#allocation12], 0 }
  0x10   :  { %30 = vsyncpa [#allocation15], 0 }
  0x11   :  { %31 = vsyncpa [#allocation4], 0 }
  0x12   :  { %33 = vsyncpa [#allocation4 + $0x1], 0  ;;  %s2802_s2 = smov 0   ;;  %s2804_s25 = smov 0  }
  0x13   :  { %s2806_s26 = smov 0   ;;  %s2808_s27 = smov 0  }
  0x14 LB: > { %3348 = sst [smem:[#allocation23_spill]] %s2661_s2  ;;  %s2823_s3 = sadd.s32 4294967295, %s2673_s27   ;;  %s2673_s27 = sphi %s2808_s27, %s3388_s27   ;;  %s2669_s26 = sphi %s2806_s26, %s3390_s26   ;;  %s2665_s25 = sphi %s2804_s25, %s3392_s25   ;;  %s2661_s2 = sphi %s2802_s2, %s3391_s2  }
  0x15   : > { %3349 = sst [smem:[#allocation24_spill]] %s2669_s26  ;;  %s1963_s28 = sadd.s32 4294967294, %s2673_s27  }
  0x16   : > { %3350 = sst [smem:[#allocation25_spill]] %s2673_s27  ;;  %s2827_s29 = sadd.s32 1, %s2673_s27  }
  0x17   : > { %3351 = sst [smem:[#allocation26_spill]] %s2827_s29  ;;  %s492_s0 = sadd.s32 1, %s2669_s26 }
  0x18   : > { %s489_s4 = ssub.s32 %s2673_s27, %s2827_s29  ;;  %p502_p0 = scmp.ne.s32.totalorder %s2669_s26, %s2665_s25 }
  0x19   : > { %p490_p1 = scmp.eq.s32.totalorder %s489_s4, 0  ;;  %p503_p2 = scmp.eq.s32.totalorder %s2823_s3, 1 }
  0x1a   : > { %p508_p3 = scmp.ne.s32.totalorder %s2665_s25, %s2661_s2  ;;  %p509_p4 = scmp.eq.s32.totalorder %s1963_s28, 1 }
  0x1b   : > { %s2838_s30 = scalar_select %p490_p1, %s2669_s26, %s492_s0  }
  0x1c   : > { %p2840_p5 = por %p503_p2, %p502_p0  ;;  %p2844_p6 = por %p509_p4, %p508_p3 }
  0x1d   : > { %3352 = sst [smem:[#allocation27_spill]] %s2838_s30  ;;  %p1964_p7 = scmp.ge.s32.totalorder %s2673_s27, 1 }
  0x1e   : > { %s3353_s5 = scalar_select %p2840_p5, 1, 0 }
  0x1f   : > { %s3355_s22 = scalar_select %p2844_p6, 1, 0 }
  0x20   : > { %3354 = sst [smem:[#allocation28_spill]] %s3353_s5  ;;  %p516_p8 = scmp.lt.s32.totalorder %s2673_s27, 3 }
  0x21   : > { %3356 = sst [smem:[#allocation29_spill]] %s3355_s22  ;;  %p3333_p9 = scmp.eq.s32.totalorder %s2823_s3, 0 }
  0x22   : > { %p2851_p10 = pnand %p1964_p7, %p516_p8  ;;  %s2675_s1 = smov [#allocation5]  }
  0x23   : > { %s543_s24 = sshll.u32 %s2675_s1, 4  ;;  %s2676_s28 = smov [#allocation8]   ;;  %s544_s24 = int_to_ptr.vmem [resolvable:$true] %s543_s24 }
  0x24   : > { %s3357_s23 = scalar_select %p2851_p10, 1, 0 }
  0x25   : > { %p2227_p11 = pneg %p2851_p10  ;;  %s571_s0 = sshll.u32 %s2676_s28, 4  ;;  %s2863_s0 = int_to_ptr.vmem [resolvable:$true] %s571_s0 }
  0x26   : > { %s2677_s30 = smov [#allocation11]   ;;  %s3359_s1 = sld [smem:[#allocation33_spill]] }
  0x27   : > { %p2859_p12 = pnand %p3333_p9, %p2227_p11  ;;  %s599_s26 = sshll.u32 %s2677_s30, 4  ;;  %s2865_s26 = int_to_ptr.vmem [resolvable:$true] %s599_s26 }
  0x29   : > { %p2875_p0 = pneg %p2859_p12 }
  0x2c   : > { %s2367_s2 = scalar_lea.hbm %s3359_s1, 16 }
  0x2d   : > { %p2368_p13 = scmp.ne.s32.totalorder %s3359_s1, %s2367_s2  ;;  %p2374_p3 = scmp.lt.u32.totalorder %s2367_s2, %s3359_s1 }
  0x2f   : > { %p2370_p1 = pnand %p2875_p0, %p2368_p13 }
  0x31   : > { %p2371_p2 = pneg %p2370_p1 }
  0x33   : > { %p2376_p4 = pnand %p2374_p3, %p2371_p2 }
  0x35   : > { %2379 = shalt.err (!%p2376_p4)
}
  0x36   : > { %s2380_s29 = scalar_lea.vmem %s544_s24, 16  ;;  %s2387_s21 = scalar_lea.vmem %s544_s24, 32 }
  0x37   : > { %p2381_p7 = scmp.ne.s32.totalorder %s544_s24, %s2380_s29  ;;  %p2388_p9 = scmp.lt.s32.totalorder %s544_s24, %s544_s24 }
  0x38   : > { %p2389_p6 = scmp.lt.s32.totalorder %s2387_s21, %s2380_s29 }
  0x39   : > { %p2383_p8 = pnand %p2381_p7, %p2875_p0 }
  0x3a   : > { %p2390_p5 = por %p2389_p6, %p2388_p9 }
  0x3b   : > { %p2384_p11 = pneg %p2383_p8 }
  0x3d   : > { %p2391_p10 = pnand %p2390_p5, %p2384_p11 }
  0x3f   : > { %2394 = shalt.err (!%p2391_p10)
}
  0x40   : > { %2233 = dma.hbm_to_vmem [thread:$0]  (!%p2859_p12), %s3359_s1, 16, %s544_s24, [#allocation6]  }
  0x41   : > { %s3361_s7 = sld [smem:[#allocation36_spill]] }
  0x47   : > { %s2395_s30 = scalar_lea.hbm %s3361_s7, 16 }
  0x48   : > { %p2396_p13 = scmp.ne.s32.totalorder %s3361_s7, %s2395_s30  ;;  %p2402_p5 = scmp.lt.u32.totalorder %s2395_s30, %s3361_s7 }
  0x4a   : > { %p2398_p1 = pnand %p2396_p13, %p2875_p0 }
  0x4c   : > { %p2399_p6 = pneg %p2398_p1 }
  0x4e   : > { %p2404_p9 = pnand %p2402_p5, %p2399_p6 }
  0x50   : > { %2407 = shalt.err (!%p2404_p9)
}
  0x51   : > { %s2408_s24 = scalar_lea.vmem %s2863_s0, 16  ;;  %s2415_s18 = scalar_lea.vmem %s2863_s0, 32 }
  0x52   : > { %p2409_p10 = scmp.ne.s32.totalorder %s2863_s0, %s2408_s24  ;;  %p2416_p4 = scmp.lt.s32.totalorder %s2863_s0, %s2863_s0 }
  0x53   : > { %p2417_p7 = scmp.lt.s32.totalorder %s2415_s18, %s2408_s24 }
  0x54   : > { %p2411_p2 = pnand %p2409_p10, %p2875_p0 }
  0x55   : > { %p2418_p8 = por %p2417_p7, %p2416_p4 }
  0x56   : > { %p2412_p3 = pneg %p2411_p2 }
  0x58   : > { %p2419_p11 = pnand %p2418_p8, %p2412_p3 }
  0x5a   : > { %2422 = shalt.err (!%p2419_p11)
}
  0x5b   : > { %2239 = dma.hbm_to_vmem [thread:$0]  (!%p2859_p12), %s3361_s7, 16, %s2863_s0, [#allocation9]  }
  0x5c   : > { %s3362_s11 = sld [smem:[#allocation37_spill]] }
  0x62   : > { %s2423_s5 = scalar_lea.hbm %s3362_s11, 16 }
  0x63   : > { %p2424_p13 = scmp.ne.s32.totalorder %s3362_s11, %s2423_s5  ;;  %p2430_p5 = scmp.lt.u32.totalorder %s2423_s5, %s3362_s11 }
  0x65   : > { %p2426_p1 = pnand %p2424_p13, %p2875_p0 }
  0x67   : > { %p2427_p6 = pneg %p2426_p1 }
  0x69   : > { %p2432_p9 = pnand %p2430_p5, %p2427_p6 }
  0x6b   : > { %2435 = shalt.err (!%p2432_p9)
}
  0x6c   : > { %s2436_s0 = scalar_lea.vmem %s2865_s26, 16  ;;  %s2443_s18 = scalar_lea.vmem %s2865_s26, 32 }
  0x6d   : > { %p2437_p10 = scmp.ne.s32.totalorder %s2865_s26, %s2436_s0  ;;  %p2444_p4 = scmp.lt.s32.totalorder %s2865_s26, %s2865_s26 }
  0x6e   : > { %p2445_p7 = scmp.lt.s32.totalorder %s2443_s18, %s2436_s0 }
  0x6f   : > { %p2439_p2 = pnand %p2437_p10, %p2875_p0 }
  0x70   : > { %p2446_p8 = por %p2445_p7, %p2444_p4 }
  0x71   : > { %p2440_p3 = pneg %p2439_p2 }
  0x73   : > { %p2447_p11 = pnand %p2446_p8, %p2440_p3 }
  0x75   : > { %2450 = shalt.err (!%p2447_p11)
}
  0x76   : > { %2245 = dma.hbm_to_vmem [thread:$0]  (!%p2859_p12), %s3362_s11, 16, %s2865_s26, [#allocation12]  }
  0x77   : > { %s2678_s22 = smov [#allocation2]   ;;  %s2679_s5 = smov [#allocation7]  }
  0x78   : > { %s529_s2 = sshll.u32 %s2678_s22, 4  ;;  %s557_s30 = sshll.u32 %s2679_s5, 4  ;;  %s530_s2 = int_to_ptr.vmem [resolvable:$true] %s529_s2  ;;  %s558_s30 = int_to_ptr.vmem [resolvable:$true] %s557_s30 }
  0x79   : > { %s3363_s24 = sld [smem:[#allocation31_spill]] }
  0x7f   : > { %s2451_s0 = scalar_lea.hbm %s3363_s24, 128 }
  0x80   : > { %p2452_p13 = scmp.ne.s32.totalorder %s3363_s24, %s2451_s0  ;;  %p2458_p5 = scmp.lt.u32.totalorder %s2451_s0, %s3363_s24 }
  0x82   : > { %p2454_p1 = pnand %p2452_p13, %p2875_p0 }
  0x84   : > { %p2455_p6 = pneg %p2454_p1 }
  0x86   : > { %p2460_p9 = pnand %p2458_p5, %p2455_p6 }
  0x88   : > { %2463 = shalt.err (!%p2460_p9)
}
  0x89   : > { %s2464_s26 = scalar_lea.vmem %s530_s2, 128  ;;  %p2472_p4 = scmp.lt.s32.totalorder %s530_s2, %s530_s2 }
  0x8a   : > { %p2465_p10 = scmp.ne.s32.totalorder %s530_s2, %s2464_s26  ;;  %p2473_p7 = scmp.lt.s32.totalorder %s2464_s26, %s2464_s26 }
  0x8c   : > { %p2467_p2 = pnand %p2465_p10, %p2875_p0  ;;  %p2474_p8 = por %p2473_p7, %p2472_p4 }
  0x8e   : > { %p2468_p3 = pneg %p2467_p2 }
  0x90   : > { %p2475_p11 = pnand %p2474_p8, %p2468_p3 }
  0x92   : > { %2478 = shalt.err (!%p2475_p11)
}
  0x93   : > { %2230 = dma.hbm_to_vmem [thread:$0]  (!%p2859_p12), %s3363_s24, 128, %s530_s2, [#allocation3]  }
  0x94   : > { %s3364_s5 = sld [smem:[#allocation35_spill]] }
  0x9a   : > { %s2479_s29 = scalar_lea.hbm %s3364_s5, 16 }
  0x9b   : > { %p2480_p13 = scmp.ne.s32.totalorder %s3364_s5, %s2479_s29  ;;  %p2486_p5 = scmp.lt.u32.totalorder %s2479_s29, %s3364_s5 }
  0x9d   : > { %p2482_p1 = pnand %p2480_p13, %p2875_p0 }
  0x9f   : > { %p2483_p6 = pneg %p2482_p1 }
  0xa1   : > { %p2488_p9 = pnand %p2486_p5, %p2483_p6 }
  0xa3   : > { %2491 = shalt.err (!%p2488_p9)
}
  0xa4   : > { %s2492_s26 = scalar_lea.vmem %s558_s30, 16  ;;  %s2499_s2 = scalar_lea.vmem %s558_s30, 32 }
  0xa5   : > { %p2493_p10 = scmp.ne.s32.totalorder %s558_s30, %s2492_s26  ;;  %p2500_p4 = scmp.lt.s32.totalorder %s558_s30, %s558_s30 }
  0xa6   : > { %p2501_p7 = scmp.lt.s32.totalorder %s2499_s2, %s2492_s26 }
  0xa7   : > { %p2495_p2 = pnand %p2493_p10, %p2875_p0 }
  0xa8   : > { %p2502_p8 = por %p2501_p7, %p2500_p4 }
  0xa9   : > { %p2496_p3 = pneg %p2495_p2 }
  0xab   : > { %p2503_p11 = pnand %p2502_p8, %p2496_p3 }
  0xad   : > { %2506 = shalt.err (!%p2503_p11)
}
  0xae   : > { %2236 = dma.hbm_to_vmem [thread:$0]  (!%p2859_p12), %s3364_s5, 16, %s558_s30, [#allocation6]  }
  0xaf   : > { %s2680_s7 = smov [#allocation10]   ;;  %s2681_s29 = smov [#allocation13]  }
  0xb0   : > { %s585_s22 = sshll.u32 %s2680_s7, 4  ;;  %s610_s21 = sshll.u32 %s2681_s29, 4  ;;  %s586_s22 = int_to_ptr.vmem [resolvable:$true] %s585_s22  ;;  %s611_s21 = int_to_ptr.vmem [resolvable:$true] %s610_s21 }
  0xb1   : > { %s2507_s19 = scalar_lea.hbm %s3307_s9, 16 }
  0xb2   : > { %p2508_p13 = scmp.ne.s32.totalorder %s3307_s9, %s2507_s19  ;;  %p2514_p5 = scmp.lt.u32.totalorder %s2507_s19, %s3307_s9 }
  0xb4   : > { %p2510_p1 = pnand %p2508_p13, %p2875_p0 }
  0xb6   : > { %p2511_p6 = pneg %p2510_p1 }
  0xb8   : > { %p2516_p9 = pnand %p2514_p5, %p2511_p6 }
  0xba   : > { %2519 = shalt.err (!%p2516_p9)
}
  0xbb   : > { %s2520_s30 = scalar_lea.vmem %s586_s22, 16  ;;  %s2527_s27 = scalar_lea.vmem %s586_s22, 32 }
  0xbc   : > { %p2521_p10 = scmp.ne.s32.totalorder %s586_s22, %s2520_s30  ;;  %p2528_p4 = scmp.lt.s32.totalorder %s586_s22, %s586_s22 }
  0xbd   : > { %p2529_p7 = scmp.lt.s32.totalorder %s2527_s27, %s2520_s30 }
  0xbe   : > { %p2523_p2 = pnand %p2521_p10, %p2875_p0 }
  0xbf   : > { %p2530_p8 = por %p2529_p7, %p2528_p4 }
  0xc0   : > { %p2524_p3 = pneg %p2523_p2 }
  0xc2   : > { %p2531_p11 = pnand %p2530_p8, %p2524_p3 }
  0xc4   : > { %2534 = shalt.err (!%p2531_p11)
}
  0xc5   : > { %2242 = dma.hbm_to_vmem [thread:$0]  (!%p2859_p12), %s3307_s9, 16, %s586_s22, [#allocation9]  }
  0xc6   : > { %s2535_s18 = scalar_lea.hbm %s3310_s12, 16 }
  0xc7   : > { %p2536_p13 = scmp.ne.s32.totalorder %s3310_s12, %s2535_s18  ;;  %p2542_p5 = scmp.lt.u32.totalorder %s2535_s18, %s3310_s12 }
  0xc9   : > { %p2538_p1 = pnand %p2536_p13, %p2875_p0 }
  0xcb   : > { %p2539_p6 = pneg %p2538_p1 }
  0xcd   : > { %p2544_p9 = pnand %p2542_p5, %p2539_p6 }
  0xcf   : > { %2547 = shalt.err (!%p2544_p9)
}
  0xd0   : > { %s2548_s30 = scalar_lea.vmem %s611_s21, 16  ;;  %s2555_s22 = scalar_lea.vmem %s611_s21, 32 }
  0xd1   : > { %p2549_p10 = scmp.ne.s32.totalorder %s611_s21, %s2548_s30  ;;  %p2556_p4 = scmp.lt.s32.totalorder %s611_s21, %s611_s21 }
  0xd2   : > { %p2557_p7 = scmp.lt.s32.totalorder %s2555_s22, %s2548_s30 }
  0xd3   : > { %p2551_p2 = pnand %p2549_p10, %p2875_p0 }
  0xd4   : > { %p2558_p8 = por %p2557_p7, %p2556_p4 }
  0xd5   : > { %p2552_p3 = pneg %p2551_p2 }
  0xd7   : > { %p2559_p11 = pnand %p2558_p8, %p2552_p3 }
  0xd9   : > { %2562 = shalt.err (!%p2559_p11)
}
  0xda   : > { %2248 = dma.hbm_to_vmem [thread:$0]  (!%p2859_p12), %s3310_s12, 16, %s611_s21, [#allocation12]  }
  0xdb   : > { %s2682_s29 = smov [#allocation14]   ;;  %s2563_s19 = scalar_lea.hbm %s3311_s13, 16 }
  0xdc   : > { %s621_s11 = sshll.u32 %s2682_s29, 4  ;;  %p2564_p13 = scmp.ne.s32.totalorder %s3311_s13, %s2563_s19  ;;  %s622_s11 = int_to_ptr.vmem [resolvable:$true] %s621_s11 }
  0xdd   : > { %p2570_p5 = scmp.lt.u32.totalorder %s2563_s19, %s3311_s13 }
  0xde   : > { %p2566_p1 = pnand %p2564_p13, %p2875_p0 }
  0xe0   : > { %p2567_p6 = pneg %p2566_p1 }
  0xe2   : > { %p2572_p9 = pnand %p2570_p5, %p2567_p6 }
  0xe4   : > { %2575 = shalt.err (!%p2572_p9)
}
  0xe5   : > { %s2576_s21 = scalar_lea.vmem %s622_s11, 16  ;;  %s2583_s22 = scalar_lea.vmem %s622_s11, 32 }
  0xe6   : > { %p2577_p10 = scmp.ne.s32.totalorder %s622_s11, %s2576_s21  ;;  %p2584_p4 = scmp.lt.s32.totalorder %s622_s11, %s622_s11 }
  0xe7   : > { %p2585_p7 = scmp.lt.s32.totalorder %s2583_s22, %s2576_s21 }
  0xe8   : > { %p2579_p2 = pnand %p2577_p10, %p2875_p0 }
  0xe9   : > { %p2586_p8 = por %p2585_p7, %p2584_p4 }
  0xea   : > { %p2580_p3 = pneg %p2579_p2 }
  0xec   : > { %p2587_p11 = pnand %p2586_p8, %p2580_p3 }
  0xee   : > { %2590 = shalt.err (!%p2587_p11)
}
  0xef   : > { %2251 = dma.hbm_to_vmem [thread:$0]  (!%p2859_p12), %s3311_s13, 16, %s622_s11, [#allocation15]  }
  0xf0   : > { %p3365_p13 = scmp.ne.s32.totalorder %s3357_s23, 0 }
  0xf1   : > { %p3366_p1 = scmp.eq.s32.totalorder (!%p3365_p13), %s2823_s3, 0 }
  0xf2   : > { %662 = sbr.rel (%p3365_p13) target bundleno = 3383 (0xd37), region = 104 }
  0xf9   : > { %2636 = dma.done.wait (%p3366_p1), [#allocation3], 128   ;;  %p3367_p0 = pmov %p3366_p1 }
  0xfb   : > { %2638 = vsyncadd (%p3367_p0), [#allocation3], 4294967168  ;;  %p3368_p6 = pmov %p3367_p0 }
  0xfc   : > { %p3369_p5 = pmov %p3367_p0 }
  0xfd   : > { %2640 = dma.done.wait (%p3368_p6), [#allocation6], 32  }
  0xfe   : > { %2642 = vsyncadd (%p3369_p5), [#allocation6], 4294967264  ;;  %p3370_p9 = pmov %p3367_p0 }
  0xff   : > { %p3371_p12 = pmov %p3367_p0 }
 0x100   : > { %2644 = dma.done.wait (%p3370_p9), [#allocation9], 32  }
 0x101   : > { %2646 = vsyncadd (%p3371_p12), [#allocation9], 4294967264  ;;  %p3372_p10 = pmov %p3367_p0 }
 0x102   : > { %p3373_p2 = pmov %p3367_p0 }
 0x103   : > { %2648 = dma.done.wait (%p3372_p10), [#allocation12], 32  }
 0x104   : > { %2650 = vsyncadd (%p3373_p2), [#allocation12], 4294967264  ;;  %p3374_p3 = pmov %p3367_p0 }
 0x105   : > { %p3375_p4 = pmov %p3367_p0 }
 0x106   : > { %2652 = dma.done.wait (%p3374_p3), [#allocation15], 16  }
 0x107   : > { %2654 = vsyncadd (%p3375_p4), [#allocation15], 4294967280  ;;  %p748_p7 = scmp.lt.s32.totalorder %s2823_s3, 1  ;;  %s3376_s11 = sld [smem:[#allocation30_spill]]  ;;  %v754_v1 = vld [vmem:[#allocation2] sm:$0xff]  ;;  %vm758_vm0 = vcmask 261120  }
 0x108   : > { %v2321_v9 = vld [vmem:[%s3304_s6] sm:$0xff]   ;;  %v2683_v10 = vmov 0.0   ;;  %vm2684_vm1 = vmmov 0   ;;  %v2322_v11 = vld [vmem:[%s3304_s6 + $0x8] sm:$0xff]   ;;  %s3377_s21 = sld [smem:[#allocation32_spill]]  ;;  %s3378_s29 = sld [smem:[#allocation34_spill]] }
 0x109   : > { %s749_s23 = scalar_select %p748_p7, %s2823_s3, 1  ;;  %2077 = vmatprep.subr.bf16.mxu0 %v2683_v10  ;;  %2081 = vmatprep.mubr.msk.bf16.mxu0 %vm2684_vm1, %v2683_v10  ;;  %v1985_v18 = vld [vmem:[#allocation5] ss:$0 sm:$0xff]  ;;  %v2323_v21 = vld [vmem:[%s3306_s8] sm:$0xff]   ;;  %v1986_v26 = vld [vmem:[#allocation8] ss:$0 sm:$0xff] }
 0x10a   : > { %2078 = vmatpush3.bf16.msra.mxu0 %v2321_v9  ;;  %2101 = vmatprep.subr.bf16.mxu1 %v2683_v10  ;;  %v2324_v23 = vld [vmem:[%s3306_s8 + $0x8] sm:$0xff]   ;;  %vm984_vm2 = vcmask 64512   ;;  %s2685_s18 = smov 112   ;;  %s2686_s19 = smov 120   ;;  %vm1046_vm3 = vcmask 1043456   ;;  %vm1436_vm4 = vcmask 130048  }
 0x10b   : > { %s1983_s4 = sshll.u32 %s749_s23, 3  ;;  %2079 = vmatprep.subr.bf16.mxu0 %v2683_v10  ;;  %2103 = vmatprep.mubr.msk.bf16.mxu1 %vm2684_vm1, %v2683_v10  ;;  %v1990_v34 = vld [vmem:[#allocation10] ss:$0 sm:$0xff]  ;;  %v1994_v42 = vld [vmem:[#allocation7] ss:$0 sm:$0xff]  ;;  %s2687_s26 = smov 104  }
 0x10c   : > { %s2688_s22 = smov 8   ;;  %s2689_s27 = smov 16   ;;  %vm1438_vm5 = vcmask 195584   ;;  %vm1814_vm6 = vcmask 261127  }
 0x10d   : > { %s751_s0 = scalar_lea.vmem %s3376_s11, %s1983_s4  ;;  %s2690_s7 = smov 24  }
 0x10e   : > { %v753_v0 = vld [vmem:[%s751_s0] sm:$0xff]  ;;  %2080 = vmatpush3.bf16.msra.mxu0 %v2322_v11  ;;  %v2326_v25 = vld [vmem:[%s3378_s29 + $0x8] sm:$0xff]   ;;  %s3379_s23 = sld [smem:[#allocation38_spill]]  ;;  %s3380_s11 = sld [smem:[#allocation39_spill]] }
 0x10f   : > { %v3056_v2 = vadd.f32 %v754_v1, %v753_v0  ;;  %2085 = vmatprep.subr.bf16.mxu0 %v2683_v10  ;;  %v1984_v16 = vld [vmem:[%s3377_s21] ss:$0 sm:$0xff]  ;;  %s3381_s0 = sld [smem:[#allocation28_spill]]  ;;  %s3382_s21 = sld [smem:[#allocation40_spill]] }
 0x110   : > { %v2325_v24 = vld [vmem:[%s3378_s29] sm:$0xff]  }
 0x111   : > { %v759_v3 = vsel %vm758_vm0, %v3056_v2, 0.0 }
 0x112   : > { %760 = vadd.xlane.f32.xlu0 %v759_v3 }
 0x115   : > { %p3383_p11 = scmp.ne.s32.totalorder %s3381_s0, 0 }
 0x19f   : > { %v761_v4 = vpop.xlane.xlu0 %760 }
 0x1a0   : > { %v763_v5 = vmul.f32 0.03125, %v761_v4 }
 0x1a2   : > { %v764_v6 = vsub.f32 %v3056_v2, %v763_v5 }
 0x1a4   : > { %v765_v7 = vmul.f32 %v764_v6, %v764_v6 }
 0x1a6   : > { %v766_v8 = vsel %vm758_vm0, %v765_v7, 0.0 }
 0x1a7   : > { %767 = vadd.xlane.f32.xlu0 %v766_v8 }
 0x234   : > { %v768_v12 = vpop.xlane.xlu0 %767 }
 0x235   : > { %v769_v13 = vmul.f32 0.03125, %v768_v12 }
 0x237   : > { %v770_v14 = vadd.f32 1e-05, %v769_v13 }
 0x239   : > { %2341 = vrsqrt.f32 %v770_v14 }
 0x243   : > { %v2342_v15 = vpop.eup %2341 }
 0x244   : > { %v772_v17 = vmul.f32 %v2342_v15, %v764_v6 }
 0x246   : > { %v779_v19 = vmul.f32 %v1984_v16, %v772_v17 }
 0x248   : > { %v786_v20 = vadd.f32 %v1985_v18, %v779_v19 }
 0x24a   : > { %v787_v22 = vpack.c.bf16 %v786_v20, %v786_v20 }
 0x24c   : > { %2082 = vmatmul.mubr.msk.bf16.vlgmr.msra.gmra.mrb[0].mxu0 %vm758_vm0, %v787_v22 }
 0x24d   : > { %2086 = vmatpush3.bf16.msra.mxu0 %v2323_v21  ;;  %2089 = vmatprep.mubr.msk.bf16.mxu0 %vm2684_vm1, %v2683_v10 }
 0x24e   : > { %2087 = vmatprep.subr.bf16.mxu0 %v2683_v10 }
 0x251   : > { %2088 = vmatpush3.bf16.msra.mxu0 %v2324_v23 }
 0x252   : > { %2093 = vmatprep.subr.bf16.mxu0 %v2683_v10 }
 0x254   : > { %2090 = vmatmul.mubr.msk.bf16.vlgmr.msra.gmra.mrb[4].mxu0 %vm758_vm0, %v787_v22 }
 0x255   : > { %2094 = vmatpush3.bf16.msra.mxu0 %v2325_v24  ;;  %2097 = vmatprep.mubr.msk.bf16.mxu0 %vm2684_vm1, %v2683_v10 }
 0x256   : > { %2095 = vmatprep.subr.bf16.mxu0 %v2683_v10 }
 0x259   : > { %2096 = vmatpush3.bf16.msra.mxu0 %v2326_v25 }
 0x25a   : > { %2107 = vmatprep.subr.bf16.mxu0 %v2683_v10 }
 0x25c   : > { %2098 = vmatmul.mubr.msk.bf16.vlgmr.msra.gmra.mrb[8].mxu0 %vm758_vm0, %v787_v22 }
 0x25d   : > { %2109 = vmatprep.mubr.msk.bf16.mxu0 %vm2684_vm1, %v2683_v10 }
 0x31f   : > { %v848_v27 = vpop.f32.mrb[0].mxu0 }
 0x320   : > { %v849_v28 = vadd.f32 %v1986_v26, %v848_v27  ;;  %v2083_v29 = vpop.f32.mrb[1].mxu0 }
 0x321   : > { %v851_v30 = vpop.f32.mrb[2].mxu0 }
 0x322   : > { %v854_v31 = vpack.c.bf16 %v849_v28, %v849_v28  ;;  %v2084_v32 = vpop.f32.mrb[3].mxu0 }
 0x324   : > { %1205 = vrot.lane.b32.xlu0 %v854_v31, %s2685_s18  ;;  %1094 = vrot.lane.b32.xlu1 %v854_v31, %s2686_s19  ;;  %v989_v33 = vsel %vm984_vm2, %v854_v31, 0 }
 0x325   : > { %2102 = vmatpush3.bf16.xpose.msra.mxu1 %v989_v33 }
 0x326   : > { %2113 = vmatprep.subr.bf16.mxu1 %v2683_v10 }
 0x327   : > { %v912_v35 = vpop.f32.mrb[4].mxu0 }
 0x328   : > { %v913_v36 = vadd.f32 %v1990_v34, %v912_v35  ;;  %v2091_v37 = vpop.f32.mrb[5].mxu0 }
 0x329   : > { %v915_v38 = vpop.f32.mrb[6].mxu0 }
 0x32a   : > { %v3108_v39 = vpack.c.bf16 %v913_v36, %v913_v36  ;;  %v2092_v40 = vpop.f32.mrb[7].mxu0 }
 0x32c   : > { %v1048_v41 = vsel %vm1046_vm3, %v3108_v39, 0 }
 0x32d   : > { %2108 = vmatpush3.bf16.msra.mxu0 %v1048_v41 }
 0x32e   : > { %2119 = vmatprep.subr.bf16.mxu0 %v2683_v10 }
 0x32f   : > { %v976_v43 = vpop.f32.mrb[8].mxu0 }
 0x330   : > { %v977_v44 = vadd.f32 %v1994_v42, %v976_v43  ;;  %v2099_v45 = vpop.f32.mrb[9].mxu0 }
 0x331   : > { %v979_v46 = vpop.f32.mrb[10].mxu0 }
 0x332   : > { %v982_v47 = vmul.f32 0.35355338, %v977_v44  ;;  %v2100_v48 = vpop.f32.mrb[11].mxu0 }
 0x334   : > { %v983_v49 = vpack.c.bf16 %v982_v47, %v982_v47 }
 0x336   : > { %1091 = vrot.lane.b32.xlu1 %v983_v49, %s2686_s19  ;;  %2104 = vmatmul.mubr.msk.bf16.vlgmr.msra.gmra.mrb[0].mxu1 %vm984_vm2, %v983_v49 }
 0x337   : > { %2115 = vmatprep.mubr.msk.bf16.mxu1 %vm2684_vm1, %v2683_v10 }
 0x33a   : > { %1203 = vrot.lane.b32.xlu1 %v983_v49, %s2685_s18 }
 0x33e   : > { %1315 = vrot.lane.b32.xlu1 %v854_v31, %s2687_s26 }
 0x342   : > { %1313 = vrot.lane.b32.xlu1 %v983_v49, %s2687_s26 }
 0x396   : > { %v1095_v50 = vpop.permute.xlu1 %1094  ;;  %v1206_v52 = vpop.permute.xlu0 %1205 }
 0x397   : > { %v1100_v51 = vsel %vm984_vm2, %v1095_v50, 0  ;;  %v1211_v54 = vsel %vm984_vm2, %v1206_v52, 0 }
 0x398   : > { %2114 = vmatpush3.bf16.xpose.msra.mxu1 %v1100_v51 }
 0x399   : > { %2125 = vmatprep.subr.bf16.mxu1 %v2683_v10 }
 0x3a8   : > { %v1092_v53 = vpop.permute.xlu1 %1091 }
 0x3a9   : > { %2116 = vmatmul.mubr.msk.bf16.vlgmr.msra.gmra.mrb[4].mxu1 %vm984_vm2, %v1092_v53 }
 0x3aa   : > { %2126 = vmatpush3.bf16.xpose.msra.mxu1 %v1211_v54  ;;  %2127 = vmatprep.mubr.msk.bf16.mxu1 %vm2684_vm1, %v2683_v10 }
 0x3ab   : > { %2137 = vmatprep.subr.bf16.mxu1 %v2683_v10 }
 0x3ac   : > { %v1204_v55 = vpop.permute.xlu1 %1203 }
 0x3b0   : > { %v1316_v56 = vpop.permute.xlu1 %1315 }
 0x3b1   : > { %v1321_v57 = vsel %vm984_vm2, %v1316_v56, 0  ;;  %2128 = vmatmul.mubr.msk.bf16.vlgmr.msra.gmra.mrb[8].mxu1 %vm984_vm2, %v1204_v55 }
 0x3b2   : > { %2138 = vmatpush3.bf16.xpose.msra.mxu1 %v1321_v57  ;;  %2139 = vmatprep.mubr.msk.bf16.mxu1 %vm2684_vm1, %v2683_v10 }
 0x3b3   : > { %2149 = vmatprep.subr.bf16.mxu1 %v2683_v10 }
 0x3b4   : > { %v1314_v58 = vpop.permute.xlu1 %1313 }
 0x3b9   : > { %2140 = vmatmul.mubr.msk.bf16.vlgmr.msra.gmra.mrb[12].mxu1 %vm984_vm2, %v1314_v58 }
 0x3ba   : > { %2153 = vmatprep.mubr.msk.bf16.mxu1 %vm2684_vm1, %v2683_v10 }
 0x409   : > { %v1025_v59 = vpop.f32.mrb[0].mxu1 }
 0x40a   : > { %v2105_v60 = vpop.f32.mrb[1].mxu1  ;;  %v1031_v61 = vsel %vm984_vm2, %v1025_v59, -inf }
 0x40b   : > { %1032 = vmax.xlane.f32.xlu1 %v1031_v61  ;;  %v1028_v62 = vpop.f32.mrb[2].mxu1 }
 0x40c   : > { %v2106_v63 = vpop.f32.mrb[3].mxu1 }
 0x40d   : > { %v2327_v63 = vld [vmem:[%s3308_s10] sm:$0xff]  }
 0x40e   : > { %2150 = vmatpush3.bf16.msra.mxu1 %v2327_v63 }
 0x40f   : > { %2151 = vmatprep.subr.bf16.mxu1 %v2683_v10 }
 0x47c   : > { %v1136_v0 = vpop.f32.mrb[4].mxu1 }
 0x47d   : > { %v2117_v1 = vpop.f32.mrb[5].mxu1  ;;  %v1142_v3 = vsel %vm984_vm2, %v1136_v0, -inf }
 0x47e   : > { %1143 = vmax.xlane.f32.xlu0 %v1142_v3  ;;  %v1139_v4 = vpop.f32.mrb[6].mxu1 }
 0x47f   : > { %v2118_v5 = vpop.f32.mrb[7].mxu1 }
 0x484   : > { %v1247_v6 = vpop.f32.mrb[8].mxu1 }
 0x485   : > { %v2129_v7 = vpop.f32.mrb[9].mxu1  ;;  %v1253_v8 = vsel %vm984_vm2, %v1247_v6, -inf }
 0x486   : > { %1254 = vmax.xlane.f32.xlu1 %v1253_v8  ;;  %v1250_v9 = vpop.f32.mrb[10].mxu1 }
 0x487   : > { %v2130_v11 = vpop.f32.mrb[11].mxu1 }
 0x48c   : > { %v1357_v12 = vpop.f32.mrb[12].mxu1 }
 0x48d   : > { %v2141_v13 = vpop.f32.mrb[13].mxu1  ;;  %v1363_v14 = vsel %vm984_vm2, %v1357_v12, -inf }
 0x48e   : > { %1364 = vmax.xlane.f32.xlu1 %v1363_v14  ;;  %v1360_v15 = vpop.f32.mrb[14].mxu1 }
 0x48f   : > { %v2142_v16 = vpop.f32.mrb[15].mxu1 }
 0x498   : > { %v1033_v17 = vpop.xlane.xlu1 %1032 }
 0x499   : > { %v1034_v18 = vsub.f32 %v1025_v59, %v1033_v17 }
 0x49b   : > { %v1035_v19 = vmul.f32 1.442695, %v1034_v18 }
 0x49d   : > { %2343 = vpow2.f32 %v1035_v19 }
 0x4a7   : > { %v2344_v20 = vpop.eup %2343 }
 0x4a8   : > { %v1037_v21 = vsel %vm984_vm2, %v2344_v20, 0.0 }
 0x4a9   : > { %1038 = vadd.xlane.f32.xlu0 %v1037_v21 }
 0x50b   : > { %v1144_v22 = vpop.xlane.xlu0 %1143 }
 0x50c   : > { %v1145_v23 = vsub.f32 %v1136_v0, %v1144_v22  ;;  %v2328_v0 = vld [vmem:[%s3308_s10 + $0x8] sm:$0xff]   ;;  %v2006_v22 = vld [vmem:[#allocation11] ss:$0 sm:$0xff] }
 0x50d   : > { %2152 = vmatpush3.bf16.msra.mxu1 %v2328_v0 }
 0x50e   : > { %v1146_v24 = vmul.f32 1.442695, %v1145_v23  ;;  %2165 = vmatprep.subr.bf16.mxu1 %v2683_v10 }
 0x510   : > { %2345 = vpow2.f32 %v1146_v24 }
 0x513   : > { %v1255_v25 = vpop.xlane.xlu1 %1254 }
 0x514   : > { %v1256_v26 = vsub.f32 %v1247_v6, %v1255_v25 }
 0x516   : > { %v1257_v27 = vmul.f32 1.442695, %v1256_v26 }
 0x518   : > { %2347 = vpow2.f32 %v1257_v27 }
 0x51a   : > { %v2346_v28 = vpop.eup %2345 }
 0x51b   : > { %v1148_v29 = vsel %vm984_vm2, %v2346_v28, 0.0  ;;  %v1365_v33 = vpop.xlane.xlu1 %1364 }
 0x51c   : > { %1149 = vadd.xlane.f32.xlu1 %v1148_v29  ;;  %v1366_v34 = vsub.f32 %v1357_v12, %v1365_v33 }
 0x51e   : > { %v1367_v35 = vmul.f32 1.442695, %v1366_v34 }
 0x522   : > { %v2348_v30 = vpop.eup %2347 }
 0x523   : > { %v1259_v31 = vsel %vm984_vm2, %v2348_v30, 0.0 }
 0x524   : > { %1260 = vadd.xlane.f32.xlu0 %v1259_v31 }
 0x52d   : > { %1265 = vrot.lane.b32.xlu1 %v3108_v39, %s2685_s18  ;;  %s746_s18 = sand.u32 1, %s2665_s25  }
 0x536   : > { %v1039_v32 = vpop.xlane.xlu0 %1038 }
 0x537   : > { %2349 = vrcp.f32 %v1039_v32 }
 0x538   : > { %2351 = vpow2.f32 %v1367_v35  ;;  %v2329_v35 = vld [vmem:[%s3312_s14] sm:$0xff]  }
 0x53a   : > { %1155 = vrot.lane.b32.xlu0 %v3108_v39, %s2686_s19  ;;  %s2031_s19 = sshll.u32 %s2823_s3, 4  ;;  %s2691_s3 = smov [#allocation16]  }
 0x541   : > { %v2350_v36 = vpop.eup %2349 }
 0x542   : > { %v1041_v37 = vmul.f32 %v2350_v36, %v2344_v20  ;;  %v2352_v40 = vpop.eup %2351 }
 0x543   : > { %v1369_v41 = vsel %vm984_vm2, %v2352_v40, 0.0 }
 0x544   : > { %v1042_v38 = vpack.c.bf16 %v1041_v37, %v1041_v37 }
 0x546   : > { %2110 = vmatmul.mubr.msk.bf16.vlgmr.msra.gmra.mrb[12].mxu0 %vm984_vm2, %v1042_v38 }
 0x547   : > { %2121 = vmatprep.mubr.msk.bf16.mxu0 %vm2684_vm1, %v2683_v10 }
 0x551   : > { %1370 = vadd.xlane.f32.xlu1 %v1369_v41  ;;  %v2010_v41 = vld [vmem:[#allocation13] ss:$0 sm:$0xff] }
 0x562   : > { %1375 = vrot.lane.b32.xlu1 %v3108_v39, %s2687_s26  ;;  %s747_s26 = scalar_lea.vmem [#allocation16], %s746_s18 }
 0x563   : > { %s1829_s2 = sshll.u32 %s747_s26, 4  ;;  %s3258_s2 = int_to_ptr.vmem [resolvable:$true] %s1829_s2 }
 0x5a9   : > { %v1150_v42 = vpop.xlane.xlu1 %1149 }
 0x5aa   : > { %2353 = vrcp.f32 %v1150_v42 }
 0x5ad   : > { %v1266_v48 = vpop.permute.xlu1 %1265 }
 0x5ae   : > { %v1271_v50 = vsel %vm1046_vm3, %v1266_v48, 0  ;;  %v2332_v48 = vld [vmem:[%s3314_s16 + $0x8] sm:$0xff]  }
 0x5b1   : > { %v1261_v43 = vpop.xlane.xlu0 %1260 }
 0x5b2   : > { %2355 = vrcp.f32 %v1261_v43  ;;  %v2011_v43 = vld [vmem:[#allocation14] ss:$0 sm:$0xff] }
 0x5b4   : > { %v2354_v44 = vpop.eup %2353 }
 0x5b5   : > { %v1152_v45 = vmul.f32 %v2354_v44, %v2346_v28  ;;  %v1156_v46 = vpop.permute.xlu0 %1155 }
 0x5b6   : > { %v1161_v47 = vsel %vm1046_vm3, %v1156_v46, 0 }
 0x5b7   : > { %2120 = vmatpush3.bf16.msra.mxu0 %v1161_v47  ;;  %v1153_v49 = vpack.c.bf16 %v1152_v45, %v1152_v45  ;;  %v2331_v47 = vld [vmem:[%s3314_s16] sm:$0xff]  }
 0x5b8   : > { %2131 = vmatprep.subr.bf16.mxu0 %v2683_v10 }
 0x5ba   : > { %2122 = vmatmul.mubr.msk.bf16.vlgmr.msra.gmra.mrb[16].mxu0 %vm984_vm2, %v1153_v49  ;;  %v2333_v49 = vld [vmem:[%s3314_s16 + $0x10] sm:$0xff]  }
 0x5bb   : > { %2132 = vmatpush3.bf16.msra.mxu0 %v1271_v50  ;;  %2133 = vmatprep.mubr.msk.bf16.mxu0 %vm2684_vm1, %v2683_v10  ;;  %v2334_v50 = vld [vmem:[%s3314_s16 + $0x18] sm:$0xff]  }
 0x5bc   : > { %v2356_v39 = vpop.eup %2355  ;;  %2143 = vmatprep.subr.bf16.mxu0 %v2683_v10 }
 0x5bd   : > { %v1263_v51 = vmul.f32 %v2356_v39, %v2348_v30  ;;  %v2335_v39 = vld [vmem:[%s3314_s16 + $0x20] sm:$0xff]  }
 0x5bf   : > { %v1264_v52 = vpack.c.bf16 %v1263_v51, %v1263_v51  ;;  %v2336_v51 = vld [vmem:[%s3314_s16 + $0x28] sm:$0xff]  }
 0x5c2   : > { %2134 = vmatmul.mubr.msk.bf16.vlgmr.msra.gmra.mrb[20].mxu0 %vm984_vm2, %v1264_v52  ;;  %v2337_v52 = vld [vmem:[%s3314_s16 + $0x30] sm:$0xff]  }
 0x5c3   : > { %2145 = vmatprep.mubr.msk.bf16.mxu0 %vm2684_vm1, %v2683_v10 }
 0x5de   : > { %v1371_v53 = vpop.xlane.xlu1 %1370 }
 0x5df   : > { %2357 = vrcp.f32 %v1371_v53  ;;  %v2338_v53 = vld [vmem:[%s3314_s16 + $0x38] sm:$0xff]  }
 0x5e2   : > { %v1376_v54 = vpop.permute.xlu1 %1375 }
 0x5e3   : > { %v1381_v55 = vsel %vm1046_vm3, %v1376_v54, 0  ;;  %v2012_v54 = vld [vmem:[%s3313_s15] ss:$0 sm:$0xff] }
 0x5e4   : > { %2144 = vmatpush3.bf16.msra.mxu0 %v1381_v55 }
 0x5e5   : > { %2157 = vmatprep.subr.bf16.mxu0 %v2683_v10 }
 0x5e9   : > { %v2358_v56 = vpop.eup %2357 }
 0x5ea   : > { %v1373_v57 = vmul.f32 %v2358_v56, %v2352_v40 }
 0x5ec   : > { %v1374_v58 = vpack.c.bf16 %v1373_v57, %v1373_v57 }
 0x5ee   : > { %2146 = vmatmul.mubr.msk.bf16.vlgmr.msra.gmra.mrb[24].mxu0 %vm984_vm2, %v1374_v58 }
 0x5ef   : > { %2161 = vmatprep.mubr.msk.bf16.mxu0 %vm2684_vm1, %v2683_v10  ;;  %2158 = vmatpush3.bf16.msra.mxu0 %v2329_v35 }
 0x5f0   : > { %2159 = vmatprep.subr.bf16.mxu0 %v2683_v10 }
 0x619   : > { %v1084_v59 = vpop.f32.mrb[12].mxu0 }
 0x61a   : > { %v2111_v60 = vpop.f32.mrb[13].mxu0 }
 0x61b   : > { %v1087_v61 = vpop.f32.mrb[14].mxu0 }
 0x61c   : > { %v2112_v62 = vpop.f32.mrb[15].mxu0 }
 0x68d   : > { %v1197_v1 = vpop.f32.mrb[16].mxu0 }
 0x68e   : > { %1424 = vrot.lane.b32.xlu0 %v1197_v1, %s2688_s22  ;;  %v2123_v3 = vpop.f32.mrb[17].mxu0  ;;  %s3256_s22 = scalar_lea.hbm %s3382_s21, %s2031_s19 }
 0x68f   : > { %v1200_v4 = vpop.f32.mrb[18].mxu0 }
 0x690   : > { %v2124_v5 = vpop.f32.mrb[19].mxu0  ;;  %v2017_v4 = vld [vmem:[%s3315_s17] ss:$0 sm:$0xff] }
 0x695   : > { %v1307_v6 = vpop.f32.mrb[20].mxu0 }
 0x696   : > { %1428 = vrot.lane.b32.xlu1 %v1307_v6, %s2689_s27  ;;  %v2135_v7 = vpop.f32.mrb[21].mxu0  ;;  %s1817_s27 = scalar_lea.sflag [#allocation4], %s746_s18 }
 0x697   : > { %v1310_v8 = vpop.f32.mrb[22].mxu0 }
 0x698   : > { %v2136_v9 = vpop.f32.mrb[23].mxu0 }
 0x6c1   : > { %v1417_v11 = vpop.f32.mrb[24].mxu0 }
 0x6c2   : > { %1432 = vrot.lane.b32.xlu0 %v1417_v11, %s2690_s7  ;;  %v2147_v12 = vpop.f32.mrb[25].mxu0  ;;  %s2591_s7 = scalar_lea.vmem %s3258_s2, 16 }
 0x6c3   : > { %v1420_v13 = vpop.f32.mrb[26].mxu0  ;;  %p2592_p8 = scmp.ne.s32.totalorder %s3258_s2, %s2591_s7 }
 0x6c4   : > { %v2148_v14 = vpop.f32.mrb[27].mxu0 }
 0x6c5   : > { %p2593_p13 = pnand %p2592_p8, %p3383_p11 }
 0x6c7   : > { %p2594_p1 = pneg %p2593_p13 }
 0x700   : > { %v1425_v15 = vpop.permute.xlu0 %1424 }
 0x701   : > { %v1435_v17 = vsel %vm984_vm2, %v1084_v59, %v1425_v15 }
 0x708   : > { %v1429_v16 = vpop.permute.xlu1 %1428 }
 0x709   : > { %v1437_v18 = vsel %vm1436_vm4, %v1435_v17, %v1429_v16 }
 0x734   : > { %v1433_v19 = vpop.permute.xlu0 %1432 }
 0x735   : > { %v1439_v20 = vsel %vm1438_vm5, %v1437_v18, %v1433_v19  ;;  %v2339_v18 = vld [vmem:[%s3318_s20] sm:$0xff]   ;;  %v2340_v19 = vld [vmem:[%s3318_s20 + $0x8] sm:$0xff]  }
 0x736   : > { %v1440_v21 = vpack.c.bf16 %v1439_v20, %v1439_v20 }
 0x738   : > { %2154 = vmatmul.mubr.msk.bf16.vlgmr.msra.gmra.mrb[16].mxu1 %vm758_vm0, %v1440_v21 }
 0x739   : > { %2181 = vmatprep.mubr.msk.bf16.mxu1 %vm2684_vm1, %v2683_v10  ;;  %2166 = vmatpush3.bf16.msra.mxu1 %v2331_v47 }
 0x73a   : > { %2167 = vmatprep.subr.bf16.mxu1 %v2683_v10 }
 0x73d   : > { %2168 = vmatpush3.bf16.msra.mxu1 %v2332_v48 }
 0x73e   : > { %2169 = vmatprep.subr.bf16.mxu1 %v2683_v10 }
 0x741   : > { %2170 = vmatpush3.bf16.msra.mxu1 %v2333_v49 }
 0x742   : > { %2171 = vmatprep.subr.bf16.mxu1 %v2683_v10 }
 0x745   : > { %2172 = vmatpush3.bf16.msra.mxu1 %v2334_v50 }
 0x746   : > { %2173 = vmatprep.subr.bf16.mxu1 %v2683_v10 }
 0x749   : > { %2174 = vmatpush3.bf16.msra.mxu1 %v2335_v39 }
 0x74a   : > { %2175 = vmatprep.subr.bf16.mxu1 %v2683_v10 }
 0x74d   : > { %2176 = vmatpush3.bf16.msra.mxu1 %v2336_v51 }
 0x74e   : > { %2177 = vmatprep.subr.bf16.mxu1 %v2683_v10 }
 0x751   : > { %2178 = vmatpush3.bf16.msra.mxu1 %v2337_v52 }
 0x752   : > { %2179 = vmatprep.subr.bf16.mxu1 %v2683_v10 }
 0x755   : > { %2180 = vmatpush3.bf16.msra.mxu1 %v2338_v53 }
 0x80b   : > { %v1501_v23 = vpop.f32.mrb[16].mxu1 }
 0x80c   : > { %v1502_v24 = vadd.f32 %v2006_v22, %v1501_v23  ;;  %v2155_v25 = vpop.f32.mrb[17].mxu1 }
 0x80d   : > { %v1504_v26 = vpop.f32.mrb[18].mxu1 }
 0x80e   : > { %v3180_v27 = vadd.f32 %v1502_v24, %v3056_v2  ;;  %v2156_v28 = vpop.f32.mrb[19].mxu1  ;;  %v2330_v2 = vld [vmem:[%s3312_s14 + $0x8] sm:$0xff]   ;;  %v2026_v24 = vld [vmem:[%s3379_s23] ss:$0 sm:$0xff]  ;;  %s2595_s23 = sshll.u32 %s2691_s3, 4  ;;  %s2596_s23 = int_to_ptr.vmem [resolvable:$false] %s2595_s23 }
 0x80f   : > { %2160 = vmatpush3.bf16.msra.mxu0 %v2330_v2  ;;  %v2027_v26 = vld [vmem:[%s3380_s11] ss:$0 sm:$0xff]  ;;  %s2597_s4 = scalar_lea.vmem %s2596_s23, 32  ;;  %p2598_p0 = scmp.lt.s32.totalorder %s3258_s2, %s2596_s23 }
 0x810   : > { %v1510_v29 = vsel %vm758_vm0, %v3180_v27, 0.0  ;;  %2185 = vmatprep.subr.bf16.mxu0 %v2683_v10  ;;  %p2599_p6 = scmp.lt.s32.totalorder %s2597_s4, %s2591_s7 }
 0x811   : > { %1511 = vadd.xlane.f32.xlu1 %v1510_v29 }
 0x812   : > { %p2600_p5 = por %p2599_p6, %p2598_p0 }
 0x814   : > { %p2601_p9 = pnand %p2600_p5, %p2594_p1 }
 0x89e   : > { %v1512_v30 = vpop.xlane.xlu1 %1511 }
 0x89f   : > { %v1513_v31 = vmul.f32 0.03125, %v1512_v30 }
 0x8a1   : > { %v1514_v32 = vsub.f32 %v3180_v27, %v1513_v31 }
 0x8a3   : > { %v1515_v33 = vmul.f32 %v1514_v32, %v1514_v32 }
 0x8a5   : > { %v1516_v34 = vsel %vm758_vm0, %v1515_v33, 0.0 }
 0x8a6   : > { %1517 = vadd.xlane.f32.xlu0 %v1516_v34 }
 0x933   : > { %v1518_v36 = vpop.xlane.xlu0 %1517 }
 0x934   : > { %v1519_v37 = vmul.f32 0.03125, %v1518_v36 }
 0x936   : > { %v1520_v38 = vadd.f32 1e-05, %v1519_v37 }
 0x938   : > { %2359 = vrsqrt.f32 %v1520_v38 }
 0x942   : > { %v2360_v40 = vpop.eup %2359 }
 0x943   : > { %v1522_v42 = vmul.f32 %v2360_v40, %v1514_v32 }
 0x945   : > { %v1529_v44 = vmul.f32 %v2010_v41, %v1522_v42 }
 0x947   : > { %v1536_v45 = vadd.f32 %v2011_v43, %v1529_v44 }
 0x949   : > { %v1537_v46 = vpack.c.bf16 %v1536_v45, %v1536_v45 }
 0x94b   : > { %2162 = vmatmul.mubr.msk.bf16.vlgmr.msra.gmra.mrb[28].mxu0 %vm758_vm0, %v1537_v46 }
 0x94c   : > { %2189 = vmatprep.mubr.msk.bf16.mxu0 %vm2684_vm1, %v2683_v10  ;;  %2186 = vmatpush3.bf16.msra.mxu0 %v2339_v18 }
 0x94d   : > { %2187 = vmatprep.subr.bf16.mxu0 %v2683_v10 }
 0x950   : > { %2188 = vmatpush3.bf16.msra.mxu0 %v2340_v19 }
 0xa1e   : > { %v1598_v55 = vpop.f32.mrb[28].mxu0 }
 0xa1f   : > { %v1599_v56 = vadd.f32 %v2012_v54, %v1598_v55  ;;  %v2163_v57 = vpop.f32.mrb[29].mxu0 }
 0xa20   : > { %v1601_v58 = vpop.f32.mrb[30].mxu0 }
 0xa21   : > { %v2016_v59 = vmul.f32 -1.702, %v1599_v56  ;;  %v2164_v60 = vpop.f32.mrb[31].mxu0 }
 0xa23   : > { %v1606_v61 = vmul.f32 1.442695, %v2016_v59 }
 0xa25   : > { %2361 = vpow2.f32 %v1606_v61 }
 0xa2f   : > { %v2362_v62 = vpop.eup %2361 }
 0xa30   : > { %v1608_v63 = vadd.f32 1.0, %v2362_v62 }
 0xa32   : > { %2363 = vrcp.f32 %v1608_v63 }
 0xa3c   : > { %v2364_v0 = vpop.eup %2363 }
 0xa3d   : > { %v1611_v1 = vmul.f32 %v2364_v0, %v1599_v56 }
 0xa3f   : > { %v1612_v3 = vpack.c.bf16 %v1611_v1, %v1611_v1 }
 0xa41   : > { %2182 = vmatmul.mubr.bf16.vlgmr.msra.gmra.mrb[20].mxu1 %v1612_v3 }
 0xb14   : > { %v1718_v5 = vpop.f32.mrb[20].mxu1 }
 0xb15   : > { %v1719_v6 = vadd.f32 %v2017_v4, %v1718_v5  ;;  %v2183_v7 = vpop.f32.mrb[21].mxu1 }
 0xb16   : > { %v1721_v8 = vpop.f32.mrb[22].mxu1 }
 0xb17   : > { %v2184_v9 = vpop.f32.mrb[23].mxu1  ;;  %v1724_v11 = vadd.f32 %v1719_v6, %v3180_v27 }
 0xb19   : > { %v1727_v12 = vsel %vm758_vm0, %v1724_v11, 0.0 }
 0xb1a   : > { %1728 = vadd.xlane.f32.xlu0 %v1727_v12 }
 0xba7   : > { %v1729_v13 = vpop.xlane.xlu0 %1728 }
 0xba8   : > { %v1730_v14 = vmul.f32 0.03125, %v1729_v13 }
 0xbaa   : > { %v1731_v15 = vsub.f32 %v1724_v11, %v1730_v14 }
 0xbac   : > { %v1732_v16 = vmul.f32 %v1731_v15, %v1731_v15 }
 0xbae   : > { %v1733_v17 = vsel %vm758_vm0, %v1732_v16, 0.0 }
 0xbaf   : > { %1734 = vadd.xlane.f32.xlu1 %v1733_v17 }
 0xc3c   : > { %v1735_v20 = vpop.xlane.xlu1 %1734 }
 0xc3d   : > { %v1736_v21 = vmul.f32 0.03125, %v1735_v20 }
 0xc3f   : > { %v1737_v22 = vadd.f32 1e-05, %v1736_v21 }
 0xc41   : > { %2365 = vrsqrt.f32 %v1737_v22 }
 0xc4b   : > { %v2366_v23 = vpop.eup %2365 }
 0xc4c   : > { %v1739_v25 = vmul.f32 %v2366_v23, %v1731_v15 }
 0xc4e   : > { %v1746_v27 = vmul.f32 %v2026_v24, %v1739_v25 }
 0xc50   : > { %v1753_v28 = vadd.f32 %v2027_v26, %v1746_v27 }
 0xc52   : > { %v1754_v29 = vpack.c.bf16 %v1753_v28, %v1753_v28 }
 0xc54   : > { %2190 = vmatmul.mubr.msk.bf16.vlgmr.msra.gmra.mrb[32].mxu0 %vm758_vm0, %v1754_v29 }
 0xd27   : > { %v1808_v10 = vpop.f32.mrb[32].mxu0 }
 0xd28   : > { %1815 = vst.msk [vmem:[%s747_s26 - $0x7] sm:$0x80] %vm1814_vm6, %v1808_v10  ;;  %v2191_v30 = vpop.f32.mrb[33].mxu0 }
 0xd29   : > { %v1811_v31 = vpop.f32.mrb[34].mxu0 }
 0xd2a   : > { %2604 = shalt.err (!%p2601_p9)
}
 0xd2b   : > { %s2605_s28 = scalar_lea.hbm %s3256_s22, 16  ;;  %s2609_s19 = scalar_lea.hbm %s3382_s21, 32 }
 0xd2c   : > { %p2606_p12 = scmp.ne.s32.totalorder %s3256_s22, %s2605_s28  ;;  %p2610_p3 = scmp.lt.u32.totalorder %s3256_s22, %s3382_s21 }
 0xd2d   : > { %p2611_p4 = scmp.lt.u32.totalorder %s2609_s19, %s2605_s28  ;;  %p2613_p8 = scmp.lt.u32.totalorder %s2605_s28, %s3256_s22 }
 0xd2e   : > { %p2607_p10 = pnand %p2606_p12, %p3383_p11 }
 0xd2f   : > { %p2612_p7 = por %p2611_p4, %p2610_p3 }
 0xd30   : > { %p2608_p2 = pneg %p2607_p10 }
 0xd31   : > { %p2614_p13 = por %p2613_p8, %p2612_p7 }
 0xd33   : > { %p2615_p1 = pnand %p2614_p13, %p2608_p2 }
 0xd35   : > { %2618 = shalt.err (!%p2615_p1)
}
 0xd36   : > { %2225 = dma.vmem_to_hbm [thread:$0]  (%p3383_p11), %s3258_s2, 16, %s3256_s22, %s1817_s27   ;;  %v2192_v32 = vpop.f32.mrb[35].mxu0 }
 0xd37 PF: > { %s3384_s30 = sld [smem:[#allocation25_spill]]  ;;  %s3385_s7 = sld [smem:[#allocation23_spill]] }
 0xd38   : > { %s3386_s3 = sld [smem:[#allocation29_spill]] }
 0xd3d   : > { %p2272_p0 = scmp.ge.s32.totalorder %s3384_s30, 2  ;;  %s1841_s23 = sand.u32 1, %s3385_s7  }
 0xd3e   : > { %p3387_p6 = scmp.ne.s32.totalorder %s3386_s3, 0  ;;  %s1842_s4 = scalar_lea.sflag [#allocation4], %s1841_s23 }
 0xd40   : > { %p2253_p5 = pnand %p2272_p0, %p3387_p6 }
 0xd42   : > { %2656 = dma.done.wait (!%p2253_p5), %s1842_s4, 16  }
 0xd43   : > { %2658 = vsyncadd (!%p2253_p5), %s1842_s4, 4294967280  ;;  %s3388_s27 = sld [smem:[#allocation26_spill]]  ;;  %s3389_s28 = sld [smem:[#allocation24_spill]] }
 0xd44   : > { %s3390_s26 = sld [smem:[#allocation27_spill]]  ;;  %s3391_s2 = smov %s2665_s25 }
 0xd49   : > { %p36_p9 = scmp.ge.s32.totalorder %s3388_s27, 4   ;;  %s3392_s25 = smov %s3389_s28 }
 0xd4b   :  { %38 = sbr.rel (!%p36_p9) target bundleno = 20 (0x14), region = 172 }
 0xd52   :  { %1846 = vsyncpa [#allocation3], 1 }
 0xd53   :  { %1848 = vsyncpa [#allocation3 + $0x1], 1 }
 0xd54   :  { %1849 = vsyncpa [#allocation6], 1 }
 0xd55   :  { %1850 = vsyncpa [#allocation9], 1 }
 0xd56   :  { %1851 = vsyncpa [#allocation12], 1 }
 0xd57   :  { %1852 = vsyncpa [#allocation15], 1 }
 0xd58   :  { %1853 = vsyncpa [#allocation4], 1 }
 0xd59   :  { %1855 = vsyncpa [#allocation4 + $0x1], 1 }

</bundles_post_ra>
